<compile_context>
chip_gen: v7x
topology: tpu7x:2x2x1
jax: 0.10.0
libtpu: 0.0.40
codegen_flags: <defaults>
</compile_context>

<pallas_src>
import jax
import jax.numpy as jnp
from jax.experimental import pallas as pl
from jax.experimental.pallas import tpu as pltpu


def make_ltl_kernel(n_layers: int, hidden_dim: int, seq_len: int, batch: int,
                    use_bf16_matmul: bool = False):
    """Build the Pallas kernel body (static config captured by closure)."""
    L, H, T, B = n_layers, hidden_dim, seq_len, batch
    mm_in = jnp.bfloat16 if use_bf16_matmul else jnp.float32

    def mm(a, w):
        # Weights are pre-cast by the wrapper; activations cast here (no-op for f32).
        return jnp.dot(a.astype(mm_in), w, preferred_element_type=jnp.float32)

    def kernel(x_ref, h0_ref, c0_ref, *args):
        # args = [w_ih0_t, w_hh0_t, b0,
        #         (w_cat_1, b_1), ..., (w_cat_{L-1}, b_{L-1}),
        #         w_fc_row, b_fc,
        #         probs_ref, hn_ref, cn_ref]
        n_w = 3 + 2 * (L - 1) + 2
        w_refs = args[:n_w]
        probs_ref, hn_ref, cn_ref = args[n_w:]

        # ---- Hoisted, loop-invariant loads (each weight read from VMEM exactly once) ----
        w_ih0 = w_refs[0][...]                                     # (E, 4H)
        w_hh0 = w_refs[1][...]                                     # (H, 4H)
        b0 = w_refs[2][...]                                        # (1, 4H)
        w_cat = [w_refs[3 + 2 * (l - 1)][...] for l in range(1, L)]  # (2H, 4H) fused
        b_up = [w_refs[4 + 2 * (l - 1)][...] for l in range(1, L)]   # (1, 4H)
        w_fc_row = w_refs[3 + 2 * (L - 1)][...]                    # (1, H)  (only column O-1)
        b_fc = w_refs[4 + 2 * (L - 1)][...]                        # (1, 1)

        # Layer-0 input projections for ALL timesteps in one matmul; bias folded in with
        # a single add (instead of T per-step adds).  Not on the recurrent critical path.
        xg = mm(x_ref[...], w_ih0) + b0                            # (T*B, 4H)

        hs = [h0_ref[l] for l in range(L)]                         # each (B, H)
        cs = [c0_ref[l] for l in range(L)]

        def cell(gates, c_prev):
            # Torch gate order i|f|g|o.  Activate the full (B, 4H) vreg once per
            # transcendental (2 EUP pushes instead of 4), slice the activated outputs.
            sig = jax.nn.sigmoid(gates)
            th = jnp.tanh(gates)
            i_g = sig[:, 0 * H:1 * H]
            f_g = sig[:, 1 * H:2 * H]
            o_g = sig[:, 3 * H:4 * H]
            g_g = th[:, 2 * H:3 * H]
            c_new = f_g * c_prev + i_g * g_g
            h_new = o_g * jnp.tanh(c_new)
            return h_new, c_new

        # ---- Fully unrolled recurrence (T static & small) ----
        for t in range(T):
            # Layer 0: batched input gates + recurrent projection.
            gates0 = xg[t * B:(t + 1) * B, :] + mm(hs[0], w_hh0)
            hs[0], cs[0] = cell(gates0, cs[0])
            h_below = hs[0]
            # Upper layers: ONE fused matmul per cell over concat([h_below, h_prev]).
            for l in range(1, L):
                # Inter-layer LSTM dropout (p=0.6) -> identity in eval mode.
                inp = jnp.concatenate([h_below, hs[l]], axis=-1)   # (B, 2H)
                gates = mm(inp, w_cat[l - 1]) + b_up[l - 1]
                hs[l], cs[l] = cell(gates, cs[l])
                h_below = hs[l]

        # Only fc column O-1 at the last timestep is ever consumed
        # (out = sigmoid(fc(lstm_out)).view(B,-1)[:, -1]).  Computed as a VPU multiply
        # + XLU lane reduction (no tiny-N MXU op, no lane-sparse (B,O) masked store).
        logit = jnp.sum(hs[L - 1] * w_fc_row, axis=-1, keepdims=True) + b_fc   # (B, 1)
        probs_ref[...] = jax.nn.sigmoid(logit)

        for l in range(L):
            hn_ref[l] = hs[l]
            cn_ref[l] = cs[l]

    return kernel


def ltlnet_forward(params, x, hidden, lens=None, use_bf16_matmul: bool = False):
    """Mirrors LTLNet.forward(x, hidden, lens) (eval-mode dropout).

    x: (B, T, E) batch-first.  `lens` is accepted but unused, like the reference.
    Returns (out, (hn, cn)) where out has shape (B,).
    """
    del lens  # unused in the reference forward
    h0, c0 = hidden
    B, T, E = x.shape
    L, _, H = h0.shape
    O = params["w_fc"].shape[0]

    # Time-major flatten: row t*B + b == x[b, t, :].
    x_flat = jnp.transpose(x, (1, 0, 2)).reshape(T * B, E).astype(jnp.float32)

    wdt = jnp.bfloat16 if use_bf16_matmul else jnp.float32

    flat_w = [
        params["w_ih_0"].T.astype(wdt),                                   # (E, 4H)
        params["w_hh_0"].T.astype(wdt),                                   # (H, 4H)
        (params["b_ih_0"] + params["b_hh_0"])[None, :].astype(jnp.float32),  # (1, 4H)
    ]
    for l in range(1, L):
        # Fused [W_ih^T ; W_hh^T] so the kernel does concat([h_below, h_prev]) @ w_cat.
        w_cat = jnp.concatenate(
            [params[f"w_ih_{l}"].T, params[f"w_hh_{l}"].T], axis=0).astype(wdt)  # (2H, 4H)
        flat_w.append(w_cat)
        flat_w.append((params[f"b_ih_{l}"] + params[f"b_hh_{l}"])[None, :].astype(jnp.float32))
    # Only FC column O-1 is ever consumed.
    flat_w.append(params["w_fc"][O - 1:O, :].astype(jnp.float32))         # (1, H)
    flat_w.append(params["b_fc"][None, O - 1:O].astype(jnp.float32))      # (1, 1)

    vmem = pl.BlockSpec(memory_space=pltpu.MemorySpace.VMEM)
    kernel = make_ltl_kernel(L, H, T, B, use_bf16_matmul=use_bf16_matmul)

    probs_last, hn, cn = pl.pallas_call(
        kernel,
        out_shape=(
            jax.ShapeDtypeStruct((B, 1), jnp.float32),
            jax.ShapeDtypeStruct((L, B, H), jnp.float32),
            jax.ShapeDtypeStruct((L, B, H), jnp.float32),
        ),
        in_specs=[vmem] * (3 + len(flat_w)),
        out_specs=(vmem, vmem, vmem),
    )(x_flat, h0, c0, *flat_w)

    out = probs_last[:, 0]                     # (B,)
    return out, (hn, cn)


def ltlnet_reference(params, x, hidden):
    """Pure-JAX eval-mode reference (torch semantics) for the self-check."""
    h0, c0 = hidden
    B, T, E = x.shape
    L, _, H = h0.shape
    hs = [h0[l] for l in range(L)]
    cs = [c0[l] for l in range(L)]
    for t in range(T):
        inp = x[:, t, :]
        for l in range(L):
            gates = (inp @ params[f"w_ih_{l}"].T + hs[l] @ params[f"w_hh_{l}"].T
                     + params[f"b_ih_{l}"] + params[f"b_hh_{l}"])
            i = jax.nn.sigmoid(gates[:, 0:H])
            f = jax.nn.sigmoid(gates[:, H:2 * H])
            g = jnp.tanh(gates[:, 2 * H:3 * H])
            o = jax.nn.sigmoid(gates[:, 3 * H:4 * H])
            cs[l] = f * cs[l] + i * g
            hs[l] = o * jnp.tanh(cs[l])
            inp = hs[l]
    out = jax.nn.sigmoid(hs[-1] @ params["w_fc"].T + params["b_fc"])[:, -1]
    return out, (jnp.stack(hs), jnp.stack(cs))


def init_params(key, output_size, embedding_dim, hidden_dim, n_layers):
    """Deterministic init mimicking torch's uniform(-1/sqrt(H), 1/sqrt(H))."""
    k = 1.0 / (hidden_dim ** 0.5)
    n_keys = 4 * n_layers + 2
    keys = jax.random.split(key, n_keys)
    params = {}
    idx = 0
    for l in range(n_layers):
        in_dim = embedding_dim if l == 0 else hidden_dim
        params[f"w_ih_{l}"] = jax.random.uniform(
            keys[idx], (4 * hidden_dim, in_dim), jnp.float32, -k, k); idx += 1
        params[f"w_hh_{l}"] = jax.random.uniform(
            keys[idx], (4 * hidden_dim, hidden_dim), jnp.float32, -k, k); idx += 1
        params[f"b_ih_{l}"] = jax.random.uniform(
            keys[idx], (4 * hidden_dim,), jnp.float32, -k, k); idx += 1
        params[f"b_hh_{l}"] = jax.random.uniform(
            keys[idx], (4 * hidden_dim,), jnp.float32, -k, k); idx += 1
    params["w_fc"] = jax.random.uniform(
        keys[idx], (output_size, hidden_dim), jnp.float32, -k, k); idx += 1
    params["b_fc"] = jax.random.uniform(
        keys[idx], (output_size,), jnp.float32, -k, k); idx += 1
    return params


if __name__ == "__main__":
    # Small shapes consistent with the module:
    B, T = 2, 8                    # batch, sequence length
    E, H, L, O = 16, 32, 2, 4      # embedding_dim, hidden_dim, n_layers, output_size

    root = jax.random.PRNGKey(0)
    k_params, k_x = jax.random.split(root)

    params = init_params(k_params, O, E, H, L)
    x = jax.random.normal(k_x, (B, T, E), jnp.float32)

    # init_hidden(batch_size): zeros of shape (n_layers, B, hidden_dim)
    h0 = jnp.zeros((L, B, H), jnp.float32)
    c0 = jnp.zeros((L, B, H), jnp.float32)
    lens = jnp.full((B,), T, jnp.int32)  # unused by forward, kept for signature parity

    out, (hn, cn) = ltlnet_forward(params, x, (h0, c0), lens)
    jax.block_until_ready((out, hn, cn))

    assert out.shape == (B,)
    assert hn.shape == (L, B, H) and cn.shape == (L, B, H)

    # Self-check against a pure-JAX reference.  Tolerance covers MXU-vs-XLA f32 matmul
    # precision differences (bf16 pass decomposition) while catching real bugs.
    out_exp, (hn_exp, cn_exp) = ltlnet_reference(params, x, (h0, c0))
    max_d = max(float(jnp.max(jnp.abs(out - out_exp))),
                float(jnp.max(jnp.abs(hn - hn_exp))),
                float(jnp.max(jnp.abs(cn - cn_exp))))
    assert jnp.allclose(out, out_exp, atol=5e-3, rtol=5e-3), f"out mismatch {max_d}"
    assert jnp.allclose(hn, hn_exp, atol=5e-3, rtol=5e-3), f"hn mismatch {max_d}"
    assert jnp.allclose(cn, cn_exp, atol=5e-3, rtol=5e-3), f"cn mismatch {max_d}"

    print("KERNEL_OK")
</pallas_src>

<mosaic_0001>
module attributes {stable_mosaic.version = 11 : i64} {
  func.func @kernel(%arg0: memref<16x16xf32, #tpu.memory_space<vmem>>, %arg1: memref<2x2x32xf32, #tpu.memory_space<vmem>>, %arg2: memref<2x2x32xf32, #tpu.memory_space<vmem>>, %arg3: memref<16x128xf32, #tpu.memory_space<vmem>>, %arg4: memref<32x128xf32, #tpu.memory_space<vmem>>, %arg5: memref<1x128xf32, #tpu.memory_space<vmem>>, %arg6: memref<64x128xf32, #tpu.memory_space<vmem>>, %arg7: memref<1x128xf32, #tpu.memory_space<vmem>>, %arg8: memref<1x32xf32, #tpu.memory_space<vmem>>, %arg9: memref<1x1xf32, #tpu.memory_space<vmem>>, %arg10: memref<2x1xf32, #tpu.memory_space<vmem>>, %arg11: memref<2x2x32xf32, #tpu.memory_space<vmem>>, %arg12: memref<2x2x32xf32, #tpu.memory_space<vmem>>) attributes {dimension_semantics = [], scalar_prefetch = 0 : i64, scratch_operands = 0 : i64, tpu.core_type = #tpu.core_type<tc>} {
    %c0 = arith.constant 0 : index
    %c0_0 = arith.constant 0 : index
    %0 = vector.load %arg3[%c0, %c0_0] : memref<16x128xf32, #tpu.memory_space<vmem>>, vector<16x128xf32>
    %c0_1 = arith.constant 0 : index
    %c0_2 = arith.constant 0 : index
    %1 = vector.load %arg4[%c0_1, %c0_2] : memref<32x128xf32, #tpu.memory_space<vmem>>, vector<32x128xf32>
    %c0_3 = arith.constant 0 : index
    %c0_4 = arith.constant 0 : index
    %2 = vector.load %arg5[%c0_3, %c0_4] : memref<1x128xf32, #tpu.memory_space<vmem>>, vector<1x128xf32>
    %c0_5 = arith.constant 0 : index
    %c0_6 = arith.constant 0 : index
    %3 = vector.load %arg6[%c0_5, %c0_6] : memref<64x128xf32, #tpu.memory_space<vmem>>, vector<64x128xf32>
    %c0_7 = arith.constant 0 : index
    %c0_8 = arith.constant 0 : index
    %4 = vector.load %arg7[%c0_7, %c0_8] : memref<1x128xf32, #tpu.memory_space<vmem>>, vector<1x128xf32>
    %c0_9 = arith.constant 0 : index
    %c0_10 = arith.constant 0 : index
    %5 = vector.load %arg8[%c0_9, %c0_10] : memref<1x32xf32, #tpu.memory_space<vmem>>, vector<1x32xf32>
    %c0_11 = arith.constant 0 : index
    %c0_12 = arith.constant 0 : index
    %6 = vector.load %arg9[%c0_11, %c0_12] : memref<1x1xf32, #tpu.memory_space<vmem>>, vector<1x1xf32>
    %c0_13 = arith.constant 0 : index
    %c0_14 = arith.constant 0 : index
    %7 = vector.load %arg0[%c0_13, %c0_14] : memref<16x16xf32, #tpu.memory_space<vmem>>, vector<16x16xf32>
    %cst = arith.constant dense<0.000000e+00> : vector<16x128xf32>
    %8 = tpu.matmul %7, %0, %cst {dimension_numbers = #tpu.dot_dimension_numbers<[1], [0], [0], [1], [0, 0, 1, 1], [], []>} : vector<16x16xf32>, vector<16x128xf32>, vector<16x128xf32> -> vector<16x128xf32>
    %9 = vector.broadcast %2 : vector<1x128xf32> to vector<16x128xf32>
    %10 = arith.addf %8, %9 : vector<16x128xf32>
    %c0_15 = arith.constant 0 : index
    %c0_16 = arith.constant 0 : index
    %c0_17 = arith.constant 0 : index
    %11 = vector.load %arg1[%c0_15, %c0_16, %c0_17] : memref<2x2x32xf32, #tpu.memory_space<vmem>>, vector<1x2x32xf32>
    %12 = vector.shape_cast %11 : vector<1x2x32xf32> to vector<2x32xf32>
    %c1 = arith.constant 1 : index
    %c0_18 = arith.constant 0 : index
    %c0_19 = arith.constant 0 : index
    %13 = vector.load %arg1[%c1, %c0_18, %c0_19] : memref<2x2x32xf32, #tpu.memory_space<vmem>>, vector<1x2x32xf32>
    %14 = vector.shape_cast %13 : vector<1x2x32xf32> to vector<2x32xf32>
    %c0_20 = arith.constant 0 : index
    %c0_21 = arith.constant 0 : index
    %c0_22 = arith.constant 0 : index
    %15 = vector.load %arg2[%c0_20, %c0_21, %c0_22] : memref<2x2x32xf32, #tpu.memory_space<vmem>>, vector<1x2x32xf32>
    %16 = vector.shape_cast %15 : vector<1x2x32xf32> to vector<2x32xf32>
    %c1_23 = arith.constant 1 : index
    %c0_24 = arith.constant 0 : index
    %c0_25 = arith.constant 0 : index
    %17 = vector.load %arg2[%c1_23, %c0_24, %c0_25] : memref<2x2x32xf32, #tpu.memory_space<vmem>>, vector<1x2x32xf32>
    %18 = vector.shape_cast %17 : vector<1x2x32xf32> to vector<2x32xf32>
    %19 = vector.extract_strided_slice %10 {offsets = [0, 0], sizes = [2, 128], strides = [1, 1]} : vector<16x128xf32> to vector<2x128xf32>
    %cst_26 = arith.constant dense<0.000000e+00> : vector<2x128xf32>
    %20 = tpu.matmul %12, %1, %cst_26 {dimension_numbers = #tpu.dot_dimension_numbers<[1], [0], [0], [1], [0, 0, 1, 1], [], []>} : vector<2x32xf32>, vector<32x128xf32>, vector<2x128xf32> -> vector<2x128xf32>
    %21 = arith.addf %19, %20 : vector<2x128xf32>
    %22 = arith.negf %21 : vector<2x128xf32>
    %23 = math.exp %22 : vector<2x128xf32>
    %cst_27 = arith.constant 1.000000e+00 : f32
    %24 = vector.broadcast %cst_27 : f32 to vector<2x128xf32>
    %25 = arith.addf %24, %23 : vector<2x128xf32>
    %26 = arith.divf %24, %25 : vector<2x128xf32>
    %27 = math.tanh %21 : vector<2x128xf32>
    %28 = vector.extract_strided_slice %26 {offsets = [0, 0], sizes = [2, 32], strides = [1, 1]} : vector<2x128xf32> to vector<2x32xf32>
    %29 = vector.extract_strided_slice %26 {offsets = [0, 32], sizes = [2, 32], strides = [1, 1]} : vector<2x128xf32> to vector<2x32xf32>
    %30 = vector.extract_strided_slice %26 {offsets = [0, 96], sizes = [2, 32], strides = [1, 1]} : vector<2x128xf32> to vector<2x32xf32>
    %31 = vector.extract_strided_slice %27 {offsets = [0, 64], sizes = [2, 32], strides = [1, 1]} : vector<2x128xf32> to vector<2x32xf32>
    %32 = arith.mulf %29, %16 : vector<2x32xf32>
    %33 = arith.mulf %28, %31 : vector<2x32xf32>
    %34 = arith.addf %32, %33 : vector<2x32xf32>
    %35 = math.tanh %34 : vector<2x32xf32>
    %36 = arith.mulf %30, %35 : vector<2x32xf32>
    %37 = tpu.concatenate %36, %14 in 1 : vector<2x32xf32>, vector<2x32xf32> -> vector<2x64xf32>
    %cst_28 = arith.constant dense<0.000000e+00> : vector<2x128xf32>
    %38 = tpu.matmul %37, %3, %cst_28 {dimension_numbers = #tpu.dot_dimension_numbers<[1], [0], [0], [1], [0, 0, 1, 1], [], []>} : vector<2x64xf32>, vector<64x128xf32>, vector<2x128xf32> -> vector<2x128xf32>
    %39 = vector.broadcast %4 : vector<1x128xf32> to vector<2x128xf32>
    %40 = arith.addf %38, %39 : vector<2x128xf32>
    %41 = arith.negf %40 : vector<2x128xf32>
    %42 = math.exp %41 : vector<2x128xf32>
    %cst_29 = arith.constant 1.000000e+00 : f32
    %43 = vector.broadcast %cst_29 : f32 to vector<2x128xf32>
    %44 = arith.addf %43, %42 : vector<2x128xf32>
    %45 = arith.divf %43, %44 : vector<2x128xf32>
    %46 = math.tanh %40 : vector<2x128xf32>
    %47 = vector.extract_strided_slice %45 {offsets = [0, 0], sizes = [2, 32], strides = [1, 1]} : vector<2x128xf32> to vector<2x32xf32>
    %48 = vector.extract_strided_slice %45 {offsets = [0, 32], sizes = [2, 32], strides = [1, 1]} : vector<2x128xf32> to vector<2x32xf32>
    %49 = vector.extract_strided_slice %45 {offsets = [0, 96], sizes = [2, 32], strides = [1, 1]} : vector<2x128xf32> to vector<2x32xf32>
    %50 = vector.extract_strided_slice %46 {offsets = [0, 64], sizes = [2, 32], strides = [1, 1]} : vector<2x128xf32> to vector<2x32xf32>
    %51 = arith.mulf %48, %18 : vector<2x32xf32>
    %52 = arith.mulf %47, %50 : vector<2x32xf32>
    %53 = arith.addf %51, %52 : vector<2x32xf32>
    %54 = math.tanh %53 : vector<2x32xf32>
    %55 = arith.mulf %49, %54 : vector<2x32xf32>
    %56 = vector.extract_strided_slice %10 {offsets = [2, 0], sizes = [2, 128], strides = [1, 1]} : vector<16x128xf32> to vector<2x128xf32>
    %cst_30 = arith.constant dense<0.000000e+00> : vector<2x128xf32>
    %57 = tpu.matmul %36, %1, %cst_30 {dimension_numbers = #tpu.dot_dimension_numbers<[1], [0], [0], [1], [0, 0, 1, 1], [], []>} : vector<2x32xf32>, vector<32x128xf32>, vector<2x128xf32> -> vector<2x128xf32>
    %58 = arith.addf %56, %57 : vector<2x128xf32>
    %59 = arith.negf %58 : vector<2x128xf32>
    %60 = math.exp %59 : vector<2x128xf32>
    %cst_31 = arith.constant 1.000000e+00 : f32
    %61 = vector.broadcast %cst_31 : f32 to vector<2x128xf32>
    %62 = arith.addf %61, %60 : vector<2x128xf32>
    %63 = arith.divf %61, %62 : vector<2x128xf32>
    %64 = math.tanh %58 : vector<2x128xf32>
    %65 = vector.extract_strided_slice %63 {offsets = [0, 0], sizes = [2, 32], strides = [1, 1]} : vector<2x128xf32> to vector<2x32xf32>
    %66 = vector.extract_strided_slice %63 {offsets = [0, 32], sizes = [2, 32], strides = [1, 1]} : vector<2x128xf32> to vector<2x32xf32>
    %67 = vector.extract_strided_slice %63 {offsets = [0, 96], sizes = [2, 32], strides = [1, 1]} : vector<2x128xf32> to vector<2x32xf32>
    %68 = vector.extract_strided_slice %64 {offsets = [0, 64], sizes = [2, 32], strides = [1, 1]} : vector<2x128xf32> to vector<2x32xf32>
    %69 = arith.mulf %66, %34 : vector<2x32xf32>
    %70 = arith.mulf %65, %68 : vector<2x32xf32>
    %71 = arith.addf %69, %70 : vector<2x32xf32>
    %72 = math.tanh %71 : vector<2x32xf32>
    %73 = arith.mulf %67, %72 : vector<2x32xf32>
    %74 = tpu.concatenate %73, %55 in 1 : vector<2x32xf32>, vector<2x32xf32> -> vector<2x64xf32>
    %cst_32 = arith.constant dense<0.000000e+00> : vector<2x128xf32>
    %75 = tpu.matmul %74, %3, %cst_32 {dimension_numbers = #tpu.dot_dimension_numbers<[1], [0], [0], [1], [0, 0, 1, 1], [], []>} : vector<2x64xf32>, vector<64x128xf32>, vector<2x128xf32> -> vector<2x128xf32>
    %76 = vector.broadcast %4 : vector<1x128xf32> to vector<2x128xf32>
    %77 = arith.addf %75, %76 : vector<2x128xf32>
    %78 = arith.negf %77 : vector<2x128xf32>
    %79 = math.exp %78 : vector<2x128xf32>
    %cst_33 = arith.constant 1.000000e+00 : f32
    %80 = vector.broadcast %cst_33 : f32 to vector<2x128xf32>
    %81 = arith.addf %80, %79 : vector<2x128xf32>
    %82 = arith.divf %80, %81 : vector<2x128xf32>
    %83 = math.tanh %77 : vector<2x128xf32>
    %84 = vector.extract_strided_slice %82 {offsets = [0, 0], sizes = [2, 32], strides = [1, 1]} : vector<2x128xf32> to vector<2x32xf32>
    %85 = vector.extract_strided_slice %82 {offsets = [0, 32], sizes = [2, 32], strides = [1, 1]} : vector<2x128xf32> to vector<2x32xf32>
    %86 = vector.extract_strided_slice %82 {offsets = [0, 96], sizes = [2, 32], strides = [1, 1]} : vector<2x128xf32> to vector<2x32xf32>
    %87 = vector.extract_strided_slice %83 {offsets = [0, 64], sizes = [2, 32], strides = [1, 1]} : vector<2x128xf32> to vector<2x32xf32>
    %88 = arith.mulf %85, %53 : vector<2x32xf32>
    %89 = arith.mulf %84, %87 : vector<2x32xf32>
    %90 = arith.addf %88, %89 : vector<2x32xf32>
    %91 = math.tanh %90 : vector<2x32xf32>
    %92 = arith.mulf %86, %91 : vector<2x32xf32>
    %93 = vector.extract_strided_slice %10 {offsets = [4, 0], sizes = [2, 128], strides = [1, 1]} : vector<16x128xf32> to vector<2x128xf32>
    %cst_34 = arith.constant dense<0.000000e+00> : vector<2x128xf32>
    %94 = tpu.matmul %73, %1, %cst_34 {dimension_numbers = #tpu.dot_dimension_numbers<[1], [0], [0], [1], [0, 0, 1, 1], [], []>} : vector<2x32xf32>, vector<32x128xf32>, vector<2x128xf32> -> vector<2x128xf32>
    %95 = arith.addf %93, %94 : vector<2x128xf32>
    %96 = arith.negf %95 : vector<2x128xf32>
    %97 = math.exp %96 : vector<2x128xf32>
    %cst_35 = arith.constant 1.000000e+00 : f32
    %98 = vector.broadcast %cst_35 : f32 to vector<2x128xf32>
    %99 = arith.addf %98, %97 : vector<2x128xf32>
    %100 = arith.divf %98, %99 : vector<2x128xf32>
    %101 = math.tanh %95 : vector<2x128xf32>
    %102 = vector.extract_strided_slice %100 {offsets = [0, 0], sizes = [2, 32], strides = [1, 1]} : vector<2x128xf32> to vector<2x32xf32>
    %103 = vector.extract_strided_slice %100 {offsets = [0, 32], sizes = [2, 32], strides = [1, 1]} : vector<2x128xf32> to vector<2x32xf32>
    %104 = vector.extract_strided_slice %100 {offsets = [0, 96], sizes = [2, 32], strides = [1, 1]} : vector<2x128xf32> to vector<2x32xf32>
    %105 = vector.extract_strided_slice %101 {offsets = [0, 64], sizes = [2, 32], strides = [1, 1]} : vector<2x128xf32> to vector<2x32xf32>
    %106 = arith.mulf %103, %71 : vector<2x32xf32>
    %107 = arith.mulf %102, %105 : vector<2x32xf32>
    %108 = arith.addf %106, %107 : vector<2x32xf32>
    %109 = math.tanh %108 : vector<2x32xf32>
    %110 = arith.mulf %104, %109 : vector<2x32xf32>
    %111 = tpu.concatenate %110, %92 in 1 : vector<2x32xf32>, vector<2x32xf32> -> vector<2x64xf32>
    %cst_36 = arith.constant dense<0.000000e+00> : vector<2x128xf32>
    %112 = tpu.matmul %111, %3, %cst_36 {dimension_numbers = #tpu.dot_dimension_numbers<[1], [0], [0], [1], [0, 0, 1, 1], [], []>} : vector<2x64xf32>, vector<64x128xf32>, vector<2x128xf32> -> vector<2x128xf32>
    %113 = vector.broadcast %4 : vector<1x128xf32> to vector<2x128xf32>
    %114 = arith.addf %112, %113 : vector<2x128xf32>
    %115 = arith.negf %114 : vector<2x128xf32>
    %116 = math.exp %115 : vector<2x128xf32>
    %cst_37 = arith.constant 1.000000e+00 : f32
    %117 = vector.broadcast %cst_37 : f32 to vector<2x128xf32>
    %118 = arith.addf %117, %116 : vector<2x128xf32>
    %119 = arith.divf %117, %118 : vector<2x128xf32>
    %120 = math.tanh %114 : vector<2x128xf32>
    %121 = vector.extract_strided_slice %119 {offsets = [0, 0], sizes = [2, 32], strides = [1, 1]} : vector<2x128xf32> to vector<2x32xf32>
    %122 = vector.extract_strided_slice %119 {offsets = [0, 32], sizes = [2, 32], strides = [1, 1]} : vector<2x128xf32> to vector<2x32xf32>
    %123 = vector.extract_strided_slice %119 {offsets = [0, 96], sizes = [2, 32], strides = [1, 1]} : vector<2x128xf32> to vector<2x32xf32>
    %124 = vector.extract_strided_slice %120 {offsets = [0, 64], sizes = [2, 32], strides = [1, 1]} : vector<2x128xf32> to vector<2x32xf32>
    %125 = arith.mulf %122, %90 : vector<2x32xf32>
    %126 = arith.mulf %121, %124 : vector<2x32xf32>
    %127 = arith.addf %125, %126 : vector<2x32xf32>
    %128 = math.tanh %127 : vector<2x32xf32>
    %129 = arith.mulf %123, %128 : vector<2x32xf32>
    %130 = vector.extract_strided_slice %10 {offsets = [6, 0], sizes = [2, 128], strides = [1, 1]} : vector<16x128xf32> to vector<2x128xf32>
    %cst_38 = arith.constant dense<0.000000e+00> : vector<2x128xf32>
    %131 = tpu.matmul %110, %1, %cst_38 {dimension_numbers = #tpu.dot_dimension_numbers<[1], [0], [0], [1], [0, 0, 1, 1], [], []>} : vector<2x32xf32>, vector<32x128xf32>, vector<2x128xf32> -> vector<2x128xf32>
    %132 = arith.addf %130, %131 : vector<2x128xf32>
    %133 = arith.negf %132 : vector<2x128xf32>
    %134 = math.exp %133 : vector<2x128xf32>
    %cst_39 = arith.constant 1.000000e+00 : f32
    %135 = vector.broadcast %cst_39 : f32 to vector<2x128xf32>
    %136 = arith.addf %135, %134 : vector<2x128xf32>
    %137 = arith.divf %135, %136 : vector<2x128xf32>
    %138 = math.tanh %132 : vector<2x128xf32>
    %139 = vector.extract_strided_slice %137 {offsets = [0, 0], sizes = [2, 32], strides = [1, 1]} : vector<2x128xf32> to vector<2x32xf32>
    %140 = vector.extract_strided_slice %137 {offsets = [0, 32], sizes = [2, 32], strides = [1, 1]} : vector<2x128xf32> to vector<2x32xf32>
    %141 = vector.extract_strided_slice %137 {offsets = [0, 96], sizes = [2, 32], strides = [1, 1]} : vector<2x128xf32> to vector<2x32xf32>
    %142 = vector.extract_strided_slice %138 {offsets = [0, 64], sizes = [2, 32], strides = [1, 1]} : vector<2x128xf32> to vector<2x32xf32>
    %143 = arith.mulf %140, %108 : vector<2x32xf32>
    %144 = arith.mulf %139, %142 : vector<2x32xf32>
    %145 = arith.addf %143, %144 : vector<2x32xf32>
    %146 = math.tanh %145 : vector<2x32xf32>
    %147 = arith.mulf %141, %146 : vector<2x32xf32>
    %148 = tpu.concatenate %147, %129 in 1 : vector<2x32xf32>, vector<2x32xf32> -> vector<2x64xf32>
    %cst_40 = arith.constant dense<0.000000e+00> : vector<2x128xf32>
    %149 = tpu.matmul %148, %3, %cst_40 {dimension_numbers = #tpu.dot_dimension_numbers<[1], [0], [0], [1], [0, 0, 1, 1], [], []>} : vector<2x64xf32>, vector<64x128xf32>, vector<2x128xf32> -> vector<2x128xf32>
    %150 = vector.broadcast %4 : vector<1x128xf32> to vector<2x128xf32>
    %151 = arith.addf %149, %150 : vector<2x128xf32>
    %152 = arith.negf %151 : vector<2x128xf32>
    %153 = math.exp %152 : vector<2x128xf32>
    %cst_41 = arith.constant 1.000000e+00 : f32
    %154 = vector.broadcast %cst_41 : f32 to vector<2x128xf32>
    %155 = arith.addf %154, %153 : vector<2x128xf32>
    %156 = arith.divf %154, %155 : vector<2x128xf32>
    %157 = math.tanh %151 : vector<2x128xf32>
    %158 = vector.extract_strided_slice %156 {offsets = [0, 0], sizes = [2, 32], strides = [1, 1]} : vector<2x128xf32> to vector<2x32xf32>
    %159 = vector.extract_strided_slice %156 {offsets = [0, 32], sizes = [2, 32], strides = [1, 1]} : vector<2x128xf32> to vector<2x32xf32>
    %160 = vector.extract_strided_slice %156 {offsets = [0, 96], sizes = [2, 32], strides = [1, 1]} : vector<2x128xf32> to vector<2x32xf32>
    %161 = vector.extract_strided_slice %157 {offsets = [0, 64], sizes = [2, 32], strides = [1, 1]} : vector<2x128xf32> to vector<2x32xf32>
    %162 = arith.mulf %159, %127 : vector<2x32xf32>
    %163 = arith.mulf %158, %161 : vector<2x32xf32>
    %164 = arith.addf %162, %163 : vector<2x32xf32>
    %165 = math.tanh %164 : vector<2x32xf32>
    %166 = arith.mulf %160, %165 : vector<2x32xf32>
    %167 = vector.extract_strided_slice %10 {offsets = [8, 0], sizes = [2, 128], strides = [1, 1]} : vector<16x128xf32> to vector<2x128xf32>
    %cst_42 = arith.constant dense<0.000000e+00> : vector<2x128xf32>
    %168 = tpu.matmul %147, %1, %cst_42 {dimension_numbers = #tpu.dot_dimension_numbers<[1], [0], [0], [1], [0, 0, 1, 1], [], []>} : vector<2x32xf32>, vector<32x128xf32>, vector<2x128xf32> -> vector<2x128xf32>
    %169 = arith.addf %167, %168 : vector<2x128xf32>
    %170 = arith.negf %169 : vector<2x128xf32>
    %171 = math.exp %170 : vector<2x128xf32>
    %cst_43 = arith.constant 1.000000e+00 : f32
    %172 = vector.broadcast %cst_43 : f32 to vector<2x128xf32>
    %173 = arith.addf %172, %171 : vector<2x128xf32>
    %174 = arith.divf %172, %173 : vector<2x128xf32>
    %175 = math.tanh %169 : vector<2x128xf32>
    %176 = vector.extract_strided_slice %174 {offsets = [0, 0], sizes = [2, 32], strides = [1, 1]} : vector<2x128xf32> to vector<2x32xf32>
    %177 = vector.extract_strided_slice %174 {offsets = [0, 32], sizes = [2, 32], strides = [1, 1]} : vector<2x128xf32> to vector<2x32xf32>
    %178 = vector.extract_strided_slice %174 {offsets = [0, 96], sizes = [2, 32], strides = [1, 1]} : vector<2x128xf32> to vector<2x32xf32>
    %179 = vector.extract_strided_slice %175 {offsets = [0, 64], sizes = [2, 32], strides = [1, 1]} : vector<2x128xf32> to vector<2x32xf32>
    %180 = arith.mulf %177, %145 : vector<2x32xf32>
    %181 = arith.mulf %176, %179 : vector<2x32xf32>
    %182 = arith.addf %180, %181 : vector<2x32xf32>
    %183 = math.tanh %182 : vector<2x32xf32>
    %184 = arith.mulf %178, %183 : vector<2x32xf32>
    %185 = tpu.concatenate %184, %166 in 1 : vector<2x32xf32>, vector<2x32xf32> -> vector<2x64xf32>
    %cst_44 = arith.constant dense<0.000000e+00> : vector<2x128xf32>
    %186 = tpu.matmul %185, %3, %cst_44 {dimension_numbers = #tpu.dot_dimension_numbers<[1], [0], [0], [1], [0, 0, 1, 1], [], []>} : vector<2x64xf32>, vector<64x128xf32>, vector<2x128xf32> -> vector<2x128xf32>
    %187 = vector.broadcast %4 : vector<1x128xf32> to vector<2x128xf32>
    %188 = arith.addf %186, %187 : vector<2x128xf32>
    %189 = arith.negf %188 : vector<2x128xf32>
    %190 = math.exp %189 : vector<2x128xf32>
    %cst_45 = arith.constant 1.000000e+00 : f32
    %191 = vector.broadcast %cst_45 : f32 to vector<2x128xf32>
    %192 = arith.addf %191, %190 : vector<2x128xf32>
    %193 = arith.divf %191, %192 : vector<2x128xf32>
    %194 = math.tanh %188 : vector<2x128xf32>
    %195 = vector.extract_strided_slice %193 {offsets = [0, 0], sizes = [2, 32], strides = [1, 1]} : vector<2x128xf32> to vector<2x32xf32>
    %196 = vector.extract_strided_slice %193 {offsets = [0, 32], sizes = [2, 32], strides = [1, 1]} : vector<2x128xf32> to vector<2x32xf32>
    %197 = vector.extract_strided_slice %193 {offsets = [0, 96], sizes = [2, 32], strides = [1, 1]} : vector<2x128xf32> to vector<2x32xf32>
    %198 = vector.extract_strided_slice %194 {offsets = [0, 64], sizes = [2, 32], strides = [1, 1]} : vector<2x128xf32> to vector<2x32xf32>
    %199 = arith.mulf %196, %164 : vector<2x32xf32>
    %200 = arith.mulf %195, %198 : vector<2x32xf32>
    %201 = arith.addf %199, %200 : vector<2x32xf32>
    %202 = math.tanh %201 : vector<2x32xf32>
    %203 = arith.mulf %197, %202 : vector<2x32xf32>
    %204 = vector.extract_strided_slice %10 {offsets = [10, 0], sizes = [2, 128], strides = [1, 1]} : vector<16x128xf32> to vector<2x128xf32>
    %cst_46 = arith.constant dense<0.000000e+00> : vector<2x128xf32>
    %205 = tpu.matmul %184, %1, %cst_46 {dimension_numbers = #tpu.dot_dimension_numbers<[1], [0], [0], [1], [0, 0, 1, 1], [], []>} : vector<2x32xf32>, vector<32x128xf32>, vector<2x128xf32> -> vector<2x128xf32>
    %206 = arith.addf %204, %205 : vector<2x128xf32>
    %207 = arith.negf %206 : vector<2x128xf32>
    %208 = math.exp %207 : vector<2x128xf32>
    %cst_47 = arith.constant 1.000000e+00 : f32
    %209 = vector.broadcast %cst_47 : f32 to vector<2x128xf32>
    %210 = arith.addf %209, %208 : vector<2x128xf32>
    %211 = arith.divf %209, %210 : vector<2x128xf32>
    %212 = math.tanh %206 : vector<2x128xf32>
    %213 = vector.extract_strided_slice %211 {offsets = [0, 0], sizes = [2, 32], strides = [1, 1]} : vector<2x128xf32> to vector<2x32xf32>
    %214 = vector.extract_strided_slice %211 {offsets = [0, 32], sizes = [2, 32], strides = [1, 1]} : vector<2x128xf32> to vector<2x32xf32>
    %215 = vector.extract_strided_slice %211 {offsets = [0, 96], sizes = [2, 32], strides = [1, 1]} : vector<2x128xf32> to vector<2x32xf32>
    %216 = vector.extract_strided_slice %212 {offsets = [0, 64], sizes = [2, 32], strides = [1, 1]} : vector<2x128xf32> to vector<2x32xf32>
    %217 = arith.mulf %214, %182 : vector<2x32xf32>
    %218 = arith.mulf %213, %216 : vector<2x32xf32>
    %219 = arith.addf %217, %218 : vector<2x32xf32>
    %220 = math.tanh %219 : vector<2x32xf32>
    %221 = arith.mulf %215, %220 : vector<2x32xf32>
    %222 = tpu.concatenate %221, %203 in 1 : vector<2x32xf32>, vector<2x32xf32> -> vector<2x64xf32>
    %cst_48 = arith.constant dense<0.000000e+00> : vector<2x128xf32>
    %223 = tpu.matmul %222, %3, %cst_48 {dimension_numbers = #tpu.dot_dimension_numbers<[1], [0], [0], [1], [0, 0, 1, 1], [], []>} : vector<2x64xf32>, vector<64x128xf32>, vector<2x128xf32> -> vector<2x128xf32>
    %224 = vector.broadcast %4 : vector<1x128xf32> to vector<2x128xf32>
    %225 = arith.addf %223, %224 : vector<2x128xf32>
    %226 = arith.negf %225 : vector<2x128xf32>
    %227 = math.exp %226 : vector<2x128xf32>
    %cst_49 = arith.constant 1.000000e+00 : f32
    %228 = vector.broadcast %cst_49 : f32 to vector<2x128xf32>
    %229 = arith.addf %228, %227 : vector<2x128xf32>
    %230 = arith.divf %228, %229 : vector<2x128xf32>
    %231 = math.tanh %225 : vector<2x128xf32>
    %232 = vector.extract_strided_slice %230 {offsets = [0, 0], sizes = [2, 32], strides = [1, 1]} : vector<2x128xf32> to vector<2x32xf32>
    %233 = vector.extract_strided_slice %230 {offsets = [0, 32], sizes = [2, 32], strides = [1, 1]} : vector<2x128xf32> to vector<2x32xf32>
    %234 = vector.extract_strided_slice %230 {offsets = [0, 96], sizes = [2, 32], strides = [1, 1]} : vector<2x128xf32> to vector<2x32xf32>
    %235 = vector.extract_strided_slice %231 {offsets = [0, 64], sizes = [2, 32], strides = [1, 1]} : vector<2x128xf32> to vector<2x32xf32>
    %236 = arith.mulf %233, %201 : vector<2x32xf32>
    %237 = arith.mulf %232, %235 : vector<2x32xf32>
    %238 = arith.addf %236, %237 : vector<2x32xf32>
    %239 = math.tanh %238 : vector<2x32xf32>
    %240 = arith.mulf %234, %239 : vector<2x32xf32>
    %241 = vector.extract_strided_slice %10 {offsets = [12, 0], sizes = [2, 128], strides = [1, 1]} : vector<16x128xf32> to vector<2x128xf32>
    %cst_50 = arith.constant dense<0.000000e+00> : vector<2x128xf32>
    %242 = tpu.matmul %221, %1, %cst_50 {dimension_numbers = #tpu.dot_dimension_numbers<[1], [0], [0], [1], [0, 0, 1, 1], [], []>} : vector<2x32xf32>, vector<32x128xf32>, vector<2x128xf32> -> vector<2x128xf32>
    %243 = arith.addf %241, %242 : vector<2x128xf32>
    %244 = arith.negf %243 : vector<2x128xf32>
    %245 = math.exp %244 : vector<2x128xf32>
    %cst_51 = arith.constant 1.000000e+00 : f32
    %246 = vector.broadcast %cst_51 : f32 to vector<2x128xf32>
    %247 = arith.addf %246, %245 : vector<2x128xf32>
    %248 = arith.divf %246, %247 : vector<2x128xf32>
    %249 = math.tanh %243 : vector<2x128xf32>
    %250 = vector.extract_strided_slice %248 {offsets = [0, 0], sizes = [2, 32], strides = [1, 1]} : vector<2x128xf32> to vector<2x32xf32>
    %251 = vector.extract_strided_slice %248 {offsets = [0, 32], sizes = [2, 32], strides = [1, 1]} : vector<2x128xf32> to vector<2x32xf32>
    %252 = vector.extract_strided_slice %248 {offsets = [0, 96], sizes = [2, 32], strides = [1, 1]} : vector<2x128xf32> to vector<2x32xf32>
    %253 = vector.extract_strided_slice %249 {offsets = [0, 64], sizes = [2, 32], strides = [1, 1]} : vector<2x128xf32> to vector<2x32xf32>
    %254 = arith.mulf %251, %219 : vector<2x32xf32>
    %255 = arith.mulf %250, %253 : vector<2x32xf32>
    %256 = arith.addf %254, %255 : vector<2x32xf32>
    %257 = math.tanh %256 : vector<2x32xf32>
    %258 = arith.mulf %252, %257 : vector<2x32xf32>
    %259 = tpu.concatenate %258, %240 in 1 : vector<2x32xf32>, vector<2x32xf32> -> vector<2x64xf32>
    %cst_52 = arith.constant dense<0.000000e+00> : vector<2x128xf32>
    %260 = tpu.matmul %259, %3, %cst_52 {dimension_numbers = #tpu.dot_dimension_numbers<[1], [0], [0], [1], [0, 0, 1, 1], [], []>} : vector<2x64xf32>, vector<64x128xf32>, vector<2x128xf32> -> vector<2x128xf32>
    %261 = vector.broadcast %4 : vector<1x128xf32> to vector<2x128xf32>
    %262 = arith.addf %260, %261 : vector<2x128xf32>
    %263 = arith.negf %262 : vector<2x128xf32>
    %264 = math.exp %263 : vector<2x128xf32>
    %cst_53 = arith.constant 1.000000e+00 : f32
    %265 = vector.broadcast %cst_53 : f32 to vector<2x128xf32>
    %266 = arith.addf %265, %264 : vector<2x128xf32>
    %267 = arith.divf %265, %266 : vector<2x128xf32>
    %268 = math.tanh %262 : vector<2x128xf32>
    %269 = vector.extract_strided_slice %267 {offsets = [0, 0], sizes = [2, 32], strides = [1, 1]} : vector<2x128xf32> to vector<2x32xf32>
    %270 = vector.extract_strided_slice %267 {offsets = [0, 32], sizes = [2, 32], strides = [1, 1]} : vector<2x128xf32> to vector<2x32xf32>
    %271 = vector.extract_strided_slice %267 {offsets = [0, 96], sizes = [2, 32], strides = [1, 1]} : vector<2x128xf32> to vector<2x32xf32>
    %272 = vector.extract_strided_slice %268 {offsets = [0, 64], sizes = [2, 32], strides = [1, 1]} : vector<2x128xf32> to vector<2x32xf32>
    %273 = arith.mulf %270, %238 : vector<2x32xf32>
    %274 = arith.mulf %269, %272 : vector<2x32xf32>
    %275 = arith.addf %273, %274 : vector<2x32xf32>
    %276 = math.tanh %275 : vector<2x32xf32>
    %277 = arith.mulf %271, %276 : vector<2x32xf32>
    %278 = vector.extract_strided_slice %10 {offsets = [14, 0], sizes = [2, 128], strides = [1, 1]} : vector<16x128xf32> to vector<2x128xf32>
    %cst_54 = arith.constant dense<0.000000e+00> : vector<2x128xf32>
    %279 = tpu.matmul %258, %1, %cst_54 {dimension_numbers = #tpu.dot_dimension_numbers<[1], [0], [0], [1], [0, 0, 1, 1], [], []>} : vector<2x32xf32>, vector<32x128xf32>, vector<2x128xf32> -> vector<2x128xf32>
    %280 = arith.addf %278, %279 : vector<2x128xf32>
    %281 = arith.negf %280 : vector<2x128xf32>
    %282 = math.exp %281 : vector<2x128xf32>
    %cst_55 = arith.constant 1.000000e+00 : f32
    %283 = vector.broadcast %cst_55 : f32 to vector<2x128xf32>
    %284 = arith.addf %283, %282 : vector<2x128xf32>
    %285 = arith.divf %283, %284 : vector<2x128xf32>
    %286 = math.tanh %280 : vector<2x128xf32>
    %287 = vector.extract_strided_slice %285 {offsets = [0, 0], sizes = [2, 32], strides = [1, 1]} : vector<2x128xf32> to vector<2x32xf32>
    %288 = vector.extract_strided_slice %285 {offsets = [0, 32], sizes = [2, 32], strides = [1, 1]} : vector<2x128xf32> to vector<2x32xf32>
    %289 = vector.extract_strided_slice %285 {offsets = [0, 96], sizes = [2, 32], strides = [1, 1]} : vector<2x128xf32> to vector<2x32xf32>
    %290 = vector.extract_strided_slice %286 {offsets = [0, 64], sizes = [2, 32], strides = [1, 1]} : vector<2x128xf32> to vector<2x32xf32>
    %291 = arith.mulf %288, %256 : vector<2x32xf32>
    %292 = arith.mulf %287, %290 : vector<2x32xf32>
    %293 = arith.addf %291, %292 : vector<2x32xf32>
    %294 = math.tanh %293 : vector<2x32xf32>
    %295 = arith.mulf %289, %294 : vector<2x32xf32>
    %296 = tpu.concatenate %295, %277 in 1 : vector<2x32xf32>, vector<2x32xf32> -> vector<2x64xf32>
    %cst_56 = arith.constant dense<0.000000e+00> : vector<2x128xf32>
    %297 = tpu.matmul %296, %3, %cst_56 {dimension_numbers = #tpu.dot_dimension_numbers<[1], [0], [0], [1], [0, 0, 1, 1], [], []>} : vector<2x64xf32>, vector<64x128xf32>, vector<2x128xf32> -> vector<2x128xf32>
    %298 = vector.broadcast %4 : vector<1x128xf32> to vector<2x128xf32>
    %299 = arith.addf %297, %298 : vector<2x128xf32>
    %300 = arith.negf %299 : vector<2x128xf32>
    %301 = math.exp %300 : vector<2x128xf32>
    %cst_57 = arith.constant 1.000000e+00 : f32
    %302 = vector.broadcast %cst_57 : f32 to vector<2x128xf32>
    %303 = arith.addf %302, %301 : vector<2x128xf32>
    %304 = arith.divf %302, %303 : vector<2x128xf32>
    %305 = math.tanh %299 : vector<2x128xf32>
    %306 = vector.extract_strided_slice %304 {offsets = [0, 0], sizes = [2, 32], strides = [1, 1]} : vector<2x128xf32> to vector<2x32xf32>
    %307 = vector.extract_strided_slice %304 {offsets = [0, 32], sizes = [2, 32], strides = [1, 1]} : vector<2x128xf32> to vector<2x32xf32>
    %308 = vector.extract_strided_slice %304 {offsets = [0, 96], sizes = [2, 32], strides = [1, 1]} : vector<2x128xf32> to vector<2x32xf32>
    %309 = vector.extract_strided_slice %305 {offsets = [0, 64], sizes = [2, 32], strides = [1, 1]} : vector<2x128xf32> to vector<2x32xf32>
    %310 = arith.mulf %307, %275 : vector<2x32xf32>
    %311 = arith.mulf %306, %309 : vector<2x32xf32>
    %312 = arith.addf %310, %311 : vector<2x32xf32>
    %313 = math.tanh %312 : vector<2x32xf32>
    %314 = arith.mulf %308, %313 : vector<2x32xf32>
    %315 = vector.broadcast %5 : vector<1x32xf32> to vector<2x32xf32>
    %316 = arith.mulf %314, %315 : vector<2x32xf32>
    %cst_58 = arith.constant dense<0.000000e+00> : vector<2xf32>
    %317 = vector.multi_reduction <add>, %316, %cst_58 [1] : vector<2x32xf32> to vector<2xf32>
    %318 = vector.shape_cast %317 : vector<2xf32> to vector<2x1xf32>
    %319 = vector.broadcast %6 : vector<1x1xf32> to vector<2x1xf32>
    %320 = arith.addf %318, %319 : vector<2x1xf32>
    %321 = arith.negf %320 : vector<2x1xf32>
    %322 = math.exp %321 : vector<2x1xf32>
    %cst_59 = arith.constant 1.000000e+00 : f32
    %323 = vector.broadcast %cst_59 : f32 to vector<2x1xf32>
    %324 = arith.addf %323, %322 : vector<2x1xf32>
    %325 = arith.divf %323, %324 : vector<2x1xf32>
    %c0_60 = arith.constant 0 : index
    %c0_61 = arith.constant 0 : index
    %326 = vector.load %arg10[%c0_60, %c0_61] : memref<2x1xf32, #tpu.memory_space<vmem>>, vector<2x1xf32>
    tpu.vector_store %arg10[%c0_60, %c0_61], %325 {strides = array<i32>} : memref<2x1xf32, #tpu.memory_space<vmem>>, vector<2x1xf32>,
    %c0_62 = arith.constant 0 : index
    %c0_63 = arith.constant 0 : index
    %c0_64 = arith.constant 0 : index
    %327 = vector.load %arg11[%c0_62, %c0_63, %c0_64] : memref<2x2x32xf32, #tpu.memory_space<vmem>>, vector<1x2x32xf32>
    %328 = vector.shape_cast %327 : vector<1x2x32xf32> to vector<2x32xf32>
    %329 = vector.shape_cast %295 : vector<2x32xf32> to vector<1x2x32xf32>
    tpu.vector_store %arg11[%c0_62, %c0_63, %c0_64], %329 {strides = array<i32>} : memref<2x2x32xf32, #tpu.memory_space<vmem>>, vector<1x2x32xf32>,
    %c0_65 = arith.constant 0 : index
    %c0_66 = arith.constant 0 : index
    %c0_67 = arith.constant 0 : index
    %330 = vector.load %arg12[%c0_65, %c0_66, %c0_67] : memref<2x2x32xf32, #tpu.memory_space<vmem>>, vector<1x2x32xf32>
    %331 = vector.shape_cast %330 : vector<1x2x32xf32> to vector<2x32xf32>
    %332 = vector.shape_cast %293 : vector<2x32xf32> to vector<1x2x32xf32>
    tpu.vector_store %arg12[%c0_65, %c0_66, %c0_67], %332 {strides = array<i32>} : memref<2x2x32xf32, #tpu.memory_space<vmem>>, vector<1x2x32xf32>,
    %c1_68 = arith.constant 1 : index
    %c0_69 = arith.constant 0 : index
    %c0_70 = arith.constant 0 : index
    %333 = vector.load %arg11[%c1_68, %c0_69, %c0_70] : memref<2x2x32xf32, #tpu.memory_space<vmem>>, vector<1x2x32xf32>
    %334 = vector.shape_cast %333 : vector<1x2x32xf32> to vector<2x32xf32>
    %335 = vector.shape_cast %314 : vector<2x32xf32> to vector<1x2x32xf32>
    tpu.vector_store %arg11[%c1_68, %c0_69, %c0_70], %335 {strides = array<i32>} : memref<2x2x32xf32, #tpu.memory_space<vmem>>, vector<1x2x32xf32>,
    %c1_71 = arith.constant 1 : index
    %c0_72 = arith.constant 0 : index
    %c0_73 = arith.constant 0 : index
    %336 = vector.load %arg12[%c1_71, %c0_72, %c0_73] : memref<2x2x32xf32, #tpu.memory_space<vmem>>, vector<1x2x32xf32>
    %337 = vector.shape_cast %336 : vector<1x2x32xf32> to vector<2x32xf32>
    %338 = vector.shape_cast %312 : vector<2x32xf32> to vector<1x2x32xf32>
    tpu.vector_store %arg12[%c1_71, %c0_72, %c0_73], %338 {strides = array<i32>} : memref<2x2x32xf32, #tpu.memory_space<vmem>>, vector<1x2x32xf32>,
    return
  }
}

</mosaic_0001>

<bundles_post_ra>
// kernel: tpu_custom_call.1
= control target key start
LH: loop header
LB: loop body
LE: loop exit
PB: predicated region body
PF: predicated region fallthrough
CT: control target
= control target key end

     0   :  { %s3373_s0 = inlined_call_operand.hbm [shape: f32[16,16], index: 0, kind: input, shape index: {}]   ;;  %s3374_s1 = inlined_call_operand.vmem [shape: f32[2,2,32], index: 1, kind: input, shape index: {}]   ;;  %s3375_s2 = inlined_call_operand.vmem [shape: f32[2,2,32], index: 2, kind: input, shape index: {}]   ;;  %s3376_s3 = inlined_call_operand.hbm [shape: f32[16,128], index: 3, kind: input, shape index: {}]   ;;  %s3377_s4 = inlined_call_operand.hbm [shape: f32[32,128], index: 4, kind: input, shape index: {}]   ;;  %s3378_s5 = inlined_call_operand.vmem [shape: f32[1,128], index: 5, kind: input, shape index: {}]   ;;  %s3379_s6 = inlined_call_operand.hbm [shape: f32[64,128], index: 6, kind: input, shape index: {}]   ;;  %s3380_s7 = inlined_call_operand.vmem [shape: f32[1,128], index: 7, kind: input, shape index: {}]   ;;  %s3381_s8 = inlined_call_operand.vmem [shape: f32[1,32], index: 8, kind: input, shape index: {}]   ;;  %s3382_s9 = inlined_call_operand.<no memory space> [shape: f32[1,1], index: 9, kind: input, shape index: {}]   ;;  %s3383_s10 = inlined_call_operand.vmem [shape: f32[2,1], index: 10, kind: output, shape index: {0}]   ;;  %s3384_s11 = inlined_call_operand.hbm [shape: f32[2,2,32], index: 11, kind: output, shape index: {1}]   ;;  %s3385_s12 = inlined_call_operand.hbm [shape: f32[2,2,32], index: 12, kind: output, shape index: {2}]  }
   0x1   :  { %v18_v0 = vstv %s3382_s9 }
   0x2   :  { %19 = vst [vmem:[#allocation2] sm:$0x1] %v18_v0 }
   0x3   :  { %20 = vsyncpa [#allocation4], 0 }
   0x4   :  { %21 = vsyncpa [#allocation7], 0 }
   0x5   :  { %22 = vsyncpa [#allocation10], 0 }
   0x6   :  { %23 = vsyncpa [#allocation5], 0 }
   0x7   :  { %24 = vsyncpa [#allocation13], 0  ;;  %s2849_s23 = smov [#allocation6]   ;;  %s2850_s25 = smov [#allocation3]  }
   0x8   :  { %s46_s24 = sshll.u32 %s2849_s23, 4  ;;  %s30_s26 = sshll.u32 %s2850_s25, 4  ;;  %s47_s24 = int_to_ptr.vmem [resolvable:$true] %s46_s24  ;;  %s2932_s26 = int_to_ptr.vmem [resolvable:$true] %s30_s26 }
   0x9   :  { %s2707_s29 = scalar_lea.hbm %s3376_s3, 256 }
   0xa   :  { %p2708_p0 = scmp.ne.s32.totalorder %s3376_s3, %s2707_s29  ;;  %p2711_p1 = scmp.lt.u32.totalorder %s2707_s29, %s3376_s3 }
   0xc   :  { %p2713_p2 = pnand %p2711_p1, %p2708_p0 }
   0xe   :  { %2716 = shalt.err (!%p2713_p2)
}
   0xf   :  { %s2717_s15 = scalar_lea.vmem %s47_s24, 256  ;;  %p2722_p4 = scmp.lt.s32.totalorder %s47_s24, %s47_s24 }
  0x10   :  { %p2718_p3 = scmp.ne.s32.totalorder %s47_s24, %s2717_s15  ;;  %p2723_p5 = scmp.lt.s32.totalorder %s2717_s15, %s2717_s15 }
  0x12   :  { %p2724_p6 = por %p2723_p5, %p2722_p4 }
  0x14   :  { %p2725_p7 = pnand %p2724_p6, %p2718_p3 }
  0x16   :  { %2728 = shalt.err (!%p2725_p7)
}
  0x17   :  { %s2851_s16 = smov 128   ;;  %s2852_s17 = smov 8  }
  0x18   :  { %52 = dma.hbm_to_vmem [thread:$0]  %s3376_s3, 256, %s47_s24, [#allocation7], %s2851_s16, %s2851_s16, %s2852_s17  }
  0x19   :  { %s2729_s22 = scalar_lea.hbm %s3373_s0, 256 }
  0x1a   :  { %p2730_p8 = scmp.ne.s32.totalorder %s3373_s0, %s2729_s22  ;;  %p2733_p9 = scmp.lt.u32.totalorder %s2729_s22, %s3373_s0 }
  0x1c   :  { %p2735_p10 = pnand %p2733_p9, %p2730_p8 }
  0x1e   :  { %2738 = shalt.err (!%p2735_p10)
}
  0x1f   :  { %s2739_s29 = scalar_lea.vmem %s2932_s26, 256  ;;  %p2744_p12 = scmp.lt.s32.totalorder %s2932_s26, %s2932_s26 }
  0x20   :  { %p2740_p11 = scmp.ne.s32.totalorder %s2932_s26, %s2739_s29  ;;  %p2745_p13 = scmp.lt.s32.totalorder %s2739_s29, %s2739_s29 }
  0x22   :  { %p2746_p0 = por %p2745_p13, %p2744_p12 }
  0x24   :  { %p2747_p1 = pnand %p2746_p0, %p2740_p11 }
  0x26   :  { %2750 = shalt.err (!%p2747_p1)
}
  0x27   :  { %36 = dma.hbm_to_vmem [thread:$0]  %s3373_s0, 256, %s2932_s26, [#allocation4], %s2851_s16, %s2851_s16, %s2852_s17  }
  0x28   :  { %s2853_s30 = smov [#allocation8]   ;;  %s2854_s9 = smov [#allocation9]  }
  0x29   :  { %s58_s13 = sshll.u32 %s2853_s30, 4  ;;  %s72_s14 = sshll.u32 %s2854_s9, 4  ;;  %s59_s13 = int_to_ptr.vmem [resolvable:$true] %s58_s13  ;;  %s2969_s14 = int_to_ptr.vmem [resolvable:$true] %s72_s14 }
  0x2a   :  { %s2751_s19 = scalar_lea.hbm %s3377_s4, 512 }
  0x2b   :  { %p2752_p2 = scmp.ne.s32.totalorder %s3377_s4, %s2751_s19  ;;  %p2755_p3 = scmp.lt.u32.totalorder %s2751_s19, %s3377_s4 }
  0x2d   :  { %p2757_p4 = pnand %p2755_p3, %p2752_p2 }
  0x2f   :  { %2760 = shalt.err (!%p2757_p4)
}
  0x30   :  { %s2761_s0 = scalar_lea.vmem %s59_s13, 512  ;;  %p2766_p6 = scmp.lt.s32.totalorder %s59_s13, %s59_s13 }
  0x31   :  { %p2762_p5 = scmp.ne.s32.totalorder %s59_s13, %s2761_s0  ;;  %p2767_p7 = scmp.lt.s32.totalorder %s2761_s0, %s2761_s0 }
  0x33   :  { %p2768_p8 = por %p2767_p7, %p2766_p6 }
  0x35   :  { %p2769_p9 = pnand %p2768_p8, %p2762_p5 }
  0x37   :  { %2772 = shalt.err (!%p2769_p9)
}
  0x38   :  { %64 = dma.hbm_to_vmem [thread:$0]  %s3377_s4, 512, %s59_s13, [#allocation7], %s2851_s16, %s2851_s16, %s2852_s17  }
  0x39   :  { %s2773_s29 = scalar_lea.hbm %s3379_s6, 1024 }
  0x3a   :  { %p2774_p10 = scmp.ne.s32.totalorder %s3379_s6, %s2773_s29  ;;  %p2777_p11 = scmp.lt.u32.totalorder %s2773_s29, %s3379_s6 }
  0x3c   :  { %p2779_p12 = pnand %p2777_p11, %p2774_p10 }
  0x3e   :  { %2782 = shalt.err (!%p2779_p12)
}
  0x3f   :  { %s2783_s15 = scalar_lea.vmem %s2969_s14, 1024  ;;  %p2788_p0 = scmp.lt.s32.totalorder %s2969_s14, %s2969_s14 }
  0x40   :  { %p2784_p13 = scmp.ne.s32.totalorder %s2969_s14, %s2783_s15  ;;  %p2789_p1 = scmp.lt.s32.totalorder %s2783_s15, %s2783_s15 }
  0x42   :  { %p2790_p2 = por %p2789_p1, %p2788_p0 }
  0x44   :  { %p2791_p3 = pnand %p2790_p2, %p2784_p13 }
  0x46   :  { %2794 = shalt.err (!%p2791_p3)
}
  0x47   :  { %78 = dma.hbm_to_vmem [thread:$0]  %s3379_s6, 1024, %s2969_s14, [#allocation10], %s2851_s16, %s2851_s16, %s2852_s17  }
  0x48   :  { %2839 = dma.done.wait [#allocation4], 256  }
  0x49   :  { %2840 = vsyncadd [#allocation4], 4294967040 }
  0x4a   :  { %2841 = dma.done.wait [#allocation7], 768  }
  0x4b   :  { %2842 = vsyncadd [#allocation7], 4294966528 }
  0x4c   :  { %2843 = dma.done.wait [#allocation10], 1024  }
  0x4d   :  { %2844 = vsyncadd [#allocation10], 4294966272  ;;  %v2855_v1 = vmov 0.0|0.0   ;;  %vm2856_vm0 = vmmov 0   ;;  %v2857_v2 = vmov 0.0   ;;  %vm123_vm1 = vcmask 130048  }
  0x4e   :  { %2434 = vmatprep.subr.bf16.mxu1 %v2855_v1  ;;  %2210 = vmatprep.mubr.msk.f32.mxu1 %vm2856_vm0, %v2857_v2  ;;  %v97_v3 = vld [vmem:[#allocation6] sm:$0xff]  ;;  %v98_v4 = vld [vmem:[#allocation6 + $0x8] sm:$0xff]  ;;  %v115_v5 = vld [vmem:[#allocation3] sm:$0xff]  ;;  %vm211_vm2 = vcmask 261120   ;;  %s2858_s18 = smov 64   ;;  %vm329_vm3 = vcmask 523264  }
  0x4f   :  { %v2412_v6 = vpack.c.bf16 %v98_v4, %v97_v3  ;;  %2169 = vmatprep.mubr.msk.f32.mxu0 %vm123_vm1, %v115_v5  ;;  %v99_v7 = vld [vmem:[#allocation8] sm:$0xff]  ;;  %v100_v8 = vld [vmem:[#allocation8 + $0x8] sm:$0xff]  ;;  %v101_v11 = vld [vmem:[#allocation8 + $0x10] sm:$0xff]  ;;  %vm1950_vm4 = vcmask 261126   ;;  %s2860_s25 = smov 96   ;;  %vm1931_vm5 = vcmask 254976  }
  0x50   :  { %v3010_v9 = vpack.c.bf16 %v100_v8, %v99_v7  ;;  %v116_v10 = vld [vmem:[#allocation3 + $0x8] sm:$0xff]  ;;  %v102_v12 = vld [vmem:[#allocation8 + $0x18] sm:$0xff]  ;;  %v104_v35 = vld [vmem:[#allocation9] sm:$0xff]  ;;  %s2862_s28 = smov [#allocation12]  }
  0x51   :  { %2413 = vmatprep.subr.bf16.mxu0 %v2412_v6  ;;  %v3016_v13 = vpack.c.bf16 %v102_v12, %v101_v11  ;;  %v205_v14 = vld [vmem:[%s3374_s1] sm:$0x3]  ;;  %v105_v36 = vld [vmem:[#allocation9 + $0x8] sm:$0xff]  ;;  %v106_v37 = vld [vmem:[#allocation9 + $0x10] sm:$0xff]  ;;  %s1988_s29 = sshll.u32 %s2862_s28, 4  ;;  %s1989_s29 = int_to_ptr.vmem [resolvable:$true] %s1988_s29 }
  0x52   :  { %2415 = vmatpush3.bf16.msra.mxu0 %v2412_v6  ;;  %2436 = vmatpush3.bf16.msra.mxu1 %v3010_v9  ;;  %v2008_v15 = vld [vmem:[%s3378_s5] ss:$0 sm:$0xff]  ;;  %s2859_s5 = smov 32   ;;  %v3049_v38 = vpack.c.bf16 %v105_v36, %v104_v35  ;;  %v108_v41 = vld [vmem:[#allocation9 + $0x20] sm:$0xff]  ;;  %v109_v42 = vld [vmem:[#allocation9 + $0x28] sm:$0xff] }
  0x53   :  { %2416 = vmatprep.subr.bf16.mxu0 %v2855_v1  ;;  %2437 = vmatprep.subr.bf16.mxu1 %v2855_v1  ;;  %v208_v24 = vld [vmem:[%s3375_s2] sm:$0x3]  ;;  %v3056_v43 = vpack.c.bf16 %v109_v42, %v108_v41  ;;  %v110_v44 = vld [vmem:[#allocation9 + $0x30] sm:$0xff]  ;;  %v2011_v48 = vld [vmem:[%s3374_s1 + $0x2] sm:$0x3] }
  0x54   :  { %v107_v39 = vld [vmem:[#allocation9 + $0x18] sm:$0xff]  ;;  %v2012_v0 = vld [vmem:[%s3375_s2 + $0x2] sm:$0x3] }
  0x55   :  { %2170 = vmatmul.mubr.msk.f32.vlgmr.msra.gmra.mrb[0].mxu0 %vm123_vm1, %v116_v10  ;;  %v3052_v40 = vpack.c.bf16 %v107_v39, %v106_v37  ;;  %v111_v45 = vld [vmem:[#allocation9 + $0x38] sm:$0xff] }
  0x56   :  { %2418 = vmatpush3.bf16.msra.mxu0 %v3010_v9  ;;  %2180 = vmatprep.mubr.msk.f32.mxu0 %vm2856_vm0, %v2857_v2  ;;  %v3061_v47 = vpack.c.bf16 %v111_v45, %v110_v44  ;;  %v3093_v54 = vld [vmem:[%s3380_s7] ss:$0 sm:$0xff] }
  0x57   :  { %2419 = vmatprep.subr.bf16.mxu0 %v2855_v1  ;;  %2439 = vmatpush3.bf16.msra.mxu1 %v3016_v13 }
  0x58   :  { %2440 = vmatprep.subr.bf16.mxu1 %v2855_v1 }
  0x5a   :  { %2421 = vmatpush3.bf16.msra.mxu0 %v3016_v13 }
  0x5b   :  { %2422 = vmatprep.subr.bf16.mxu0 %v2855_v1 }
  0x5d   :  { %2181 = vmatmul.mubr.msk.f32.vlgmr.msra.gmra.mrb[2].mxu0 %vm211_vm2, %v205_v14 }
  0x5e   :  { %2199 = vmatprep.mubr.msk.f32.mxu0 %vm2856_vm0, %v2857_v2  ;;  %2424 = vmatpush3.bf16.msra.mxu0 %v3049_v38 }
  0x5f   :  { %2425 = vmatprep.subr.bf16.mxu0 %v2855_v1 }
  0x62   :  { %2427 = vmatpush3.bf16.msra.mxu0 %v3052_v40 }
  0x63   :  { %2428 = vmatprep.subr.bf16.mxu0 %v2855_v1 }
  0x66   :  { %2430 = vmatpush3.bf16.msra.mxu0 %v3056_v43 }
  0x67   :  { %2431 = vmatprep.subr.bf16.mxu0 %v2855_v1 }
  0x6a   :  { %2433 = vmatpush3.bf16.msra.mxu0 %v3061_v47 }
  0x6b   :  { %2452 = vmatprep.subr.bf16.mxu0 %v2855_v1 }
 0x128   :  { %v2171_v16 = vpop.f32.mrb[0].mxu0 }
 0x129   :  { %v3035_v17 = vadd.f32 %v2171_v16, %v2008_v15  ;;  %v196_v18 = vpop.f32.mrb[1].mxu0 }
 0x12a   :  { %v3037_v19 = vadd.f32 %v2008_v15, %v196_v18 }
 0x130   :  { %v281_v20 = vpop.f32.mrb[2].mxu0 }
 0x131   :  { %v285_v21 = vadd.f32 %v281_v20, %v3037_v19  ;;  %v2182_v22 = vpop.f32.mrb[3].mxu0 }
 0x133   :  { %2575 = vtanh.f32 %v285_v21  ;;  %v2014_v25 = vmul.f32 -1.442695, %v285_v21 }
 0x135   :  { %2577 = vpow2.f32 %v2014_v25 }
 0x13d   :  { %v2576_v23 = vpop.eup %2575 }
 0x13e   :  { %299 = vrot.lane.b32.xlu0 %v2576_v23, %s2858_s18 }
 0x13f   :  { %v2578_v26 = vpop.eup %2577 }
 0x140   :  { %v289_v27 = vadd.f32 1.0, %v2578_v26 }
 0x142   :  { %294 = vrot.lane.b32.xlu0 %v208_v24, %s2859_s5  ;;  %2579 = vrcp.f32 %v289_v27 }
 0x14c   :  { %v2580_v28 = vpop.eup %2579 }
 0x1b0   :  { %v300_v29 = vpop.permute.xlu0 %299 }
 0x1b1   :  { %v302_v30 = vmul.f32 %v2580_v28, %v300_v29 }
 0x1b3   :  { %304 = vrot.lane.b32.xlu1 %v302_v30, %s2859_s5 }
 0x1b4   :  { %v295_v31 = vpop.permute.xlu0 %294 }
 0x1b5   :  { %v297_v32 = vmul.f32 %v2580_v28, %v295_v31 }
 0x225   :  { %v305_v33 = vpop.permute.xlu1 %304 }
 0x226   :  { %v3046_v34 = vadd.f32 %v305_v33, %v297_v32 }
 0x228   :  { %2581 = vtanh.f32 %v3046_v34  ;;  %v515_v20 = vrot.slane %v3046_v34, 6 }
 0x232   :  { %v2582_v46 = vpop.eup %2581 }
 0x233   :  { %310 = vrot.lane.b32.xlu1 %v2582_v46, %s2858_s18 }
 0x237   :  { %319 = vrot.lane.b32.xlu1 %v2011_v48, %s2859_s5 }
 0x2a5   :  { %v311_v49 = vpop.permute.xlu1 %310 }
 0x2a6   :  { %v313_v50 = vmul.f32 %v2580_v28, %v311_v49 }
 0x2a8   :  { %315 = vrot.lane.b32.xlu0 %v313_v50, %s2859_s5 }
 0x2a9   :  { %v320_v51 = vpop.permute.xlu1 %319 }
 0x31a   :  { %v316_v52 = vpop.permute.xlu0 %315 }
 0x31b   :  { %v322_v53 = vsel %vm211_vm2, %v316_v52, %v320_v51  ;;  %2211 = vmatmul.mubr.msk.f32.vlgmr.msra.gmra.mrb[0].mxu1 %vm211_vm2, %v316_v52 }
 0x31c   :  { %2200 = vmatmul.mubr.msk.f32.vlgmr.msra.gmra.mrb[4].mxu0 %vm329_vm3, %v322_v53  ;;  %2442 = vmatpush3.bf16.msra.mxu1 %v3049_v38 }
 0x31d   :  { %2443 = vmatprep.subr.bf16.mxu1 %v2855_v1  ;;  %2454 = vmatpush3.bf16.msra.mxu0 %v3010_v9 }
 0x31e   :  { %2455 = vmatprep.subr.bf16.mxu0 %v2855_v1  ;;  %2229 = vmatprep.mubr.msk.f32.mxu1 %vm2856_vm0, %v2857_v2 }
 0x31f   :  { %2240 = vmatprep.mubr.msk.f32.mxu0 %vm2856_vm0, %v2857_v2 }
 0x320   :  { %2445 = vmatpush3.bf16.msra.mxu1 %v3052_v40 }
 0x321   :  { %2446 = vmatprep.subr.bf16.mxu1 %v2855_v1  ;;  %2457 = vmatpush3.bf16.msra.mxu0 %v3016_v13 }
 0x322   :  { %2458 = vmatprep.subr.bf16.mxu0 %v2855_v1 }
 0x324   :  { %2448 = vmatpush3.bf16.msra.mxu1 %v3056_v43 }
 0x325   :  { %2449 = vmatprep.subr.bf16.mxu1 %v2855_v1 }
 0x328   :  { %2451 = vmatpush3.bf16.msra.mxu1 %v3061_v47 }
 0x329   :  { %2470 = vmatprep.subr.bf16.mxu1 %v2855_v1 }
 0x3ee   :  { %v499_v55 = vpop.f32.mrb[0].mxu1 }
 0x3ef   :  { %v504_v56 = vrot.slane %v499_v55, 6  ;;  %v399_v57 = vpop.f32.mrb[4].mxu0  ;;  %v2212_v58 = vpop.f32.mrb[1].mxu1 }
 0x3f0   :  { %v400_v59 = vadd.f32 %v3093_v54, %v399_v57  ;;  %v2201_v60 = vpop.f32.mrb[5].mxu0 }
 0x3f1   :  { %v506_v61 = vadd.f32 %v504_v56, %v3037_v19 }
 0x3f2   :  { %2583 = vtanh.f32 %v400_v59  ;;  %v2017_v3 = vmul.f32 -1.442695, %v400_v59 }
 0x3f3   :  { %2585 = vtanh.f32 %v506_v61  ;;  %v2019_v4 = vmul.f32 -1.442695, %v506_v61 }
 0x3f4   :  { %2587 = vpow2.f32 %v2017_v3 }
 0x3f5   :  { %2589 = vpow2.f32 %v2019_v4 }
 0x3fc   :  { %v2584_v62 = vpop.eup %2583 }
 0x3fd   :  { %v2586_v63 = vpop.eup %2585  ;;  %416 = vrot.lane.b32.xlu0 %v2584_v62, %s2858_s18 }
 0x3fe   :  { %519 = vrot.lane.b32.xlu1 %v2586_v63, %s2858_s18  ;;  %v2588_v5 = vpop.eup %2587 }
 0x3ff   :  { %v2590_v6 = vpop.eup %2589  ;;  %v406_v7 = vadd.f32 1.0, %v2588_v5 }
 0x400   :  { %v510_v8 = vadd.f32 1.0, %v2590_v6 }
 0x401   :  { %411 = vrot.lane.b32.xlu0 %v2012_v0, %s2859_s5  ;;  %2591 = vrcp.f32 %v406_v7 }
 0x402   :  { %2593 = vrcp.f32 %v510_v8 }
 0x40b   :  { %v2592_v10 = vpop.eup %2591 }
 0x40c   :  { %v2594_v12 = vpop.eup %2593 }
 0x40d   :  { %v517_v23 = vmul.f32 %v2594_v12, %v515_v20 }
 0x46f   :  { %v417_v11 = vpop.permute.xlu0 %416 }
 0x470   :  { %v419_v14 = vmul.f32 %v2592_v10, %v417_v11  ;;  %v520_v15 = vpop.permute.xlu1 %519 }
 0x471   :  { %v522_v16 = vmul.f32 %v2594_v12, %v520_v15 }
 0x472   :  { %421 = vrot.lane.b32.xlu1 %v419_v14, %s2859_s5 }
 0x473   :  { %524 = vrot.lane.b32.xlu0 %v522_v16, %s2859_s5  ;;  %v412_v18 = vpop.permute.xlu0 %411 }
 0x474   :  { %v414_v21 = vmul.f32 %v2592_v10, %v412_v18 }
 0x4e4   :  { %v422_v22 = vpop.permute.xlu1 %421 }
 0x4e5   :  { %v3106_v24 = vadd.f32 %v422_v22, %v414_v21  ;;  %v525_v25 = vpop.permute.xlu0 %524 }
 0x4e6   :  { %v3108_v26 = vadd.f32 %v525_v25, %v517_v23 }
 0x4e7   :  { %2595 = vtanh.f32 %v3106_v24 }
 0x4e8   :  { %2597 = vtanh.f32 %v3108_v26  ;;  %v729_v5 = vrot.slane %v3108_v26, 6 }
 0x4f1   :  { %v2596_v27 = vpop.eup %2595 }
 0x4f2   :  { %v2598_v28 = vpop.eup %2597  ;;  %427 = vrot.lane.b32.xlu1 %v2596_v27, %s2858_s18 }
 0x4f3   :  { %530 = vrot.lane.b32.xlu0 %v2598_v28, %s2858_s18 }
 0x564   :  { %v428_v29 = vpop.permute.xlu1 %427 }
 0x565   :  { %v430_v30 = vmul.f32 %v2592_v10, %v428_v29  ;;  %v531_v31 = vpop.permute.xlu0 %530 }
 0x566   :  { %v533_v32 = vmul.f32 %v2594_v12, %v531_v31 }
 0x567   :  { %v539_v33 = vrot.slane %v430_v30, 6 }
 0x568   :  { %535 = vrot.lane.b32.xlu1 %v533_v32, %s2859_s5  ;;  %v642_v34 = vrot.slane %v533_v32, 2 }
 0x569   :  { %540 = vrot.lane.b32.xlu0 %v539_v33, %s2858_s18 }
 0x56c   :  { %643 = vrot.lane.b32.xlu1 %v642_v34, %s2859_s5 }
 0x5da   :  { %v536_v35 = vpop.permute.xlu1 %535 }
 0x5db   :  { %v541_v36 = vpop.permute.xlu0 %540 }
 0x5dc   :  { %v543_v37 = vsel %vm211_vm2, %v536_v35, %v541_v36 }
 0x5dd   :  { %v545_v39 = vrot.slane %v543_v37, 2 }
 0x5de   :  { %v644_v41 = vpop.permute.xlu1 %643 }
 0x5df   :  { %2230 = vmatmul.mubr.msk.f32.vlgmr.msra.gmra.mrb[2].mxu1 %vm329_vm3, %v545_v39  ;;  %2241 = vmatmul.mubr.msk.f32.vlgmr.msra.gmra.mrb[6].mxu0 %vm211_vm2, %v644_v41 }
 0x5e0   :  { %2460 = vmatpush3.bf16.msra.mxu0 %v3049_v38  ;;  %2472 = vmatpush3.bf16.msra.mxu1 %v3010_v9 }
 0x5e1   :  { %2461 = vmatprep.subr.bf16.mxu0 %v2855_v1  ;;  %2473 = vmatprep.subr.bf16.mxu1 %v2855_v1 }
 0x5e2   :  { %2259 = vmatprep.mubr.msk.f32.mxu0 %vm2856_vm0, %v2857_v2  ;;  %2270 = vmatprep.mubr.msk.f32.mxu1 %vm2856_vm0, %v2857_v2 }
 0x5e4   :  { %2463 = vmatpush3.bf16.msra.mxu0 %v3052_v40  ;;  %2475 = vmatpush3.bf16.msra.mxu1 %v3016_v13 }
 0x5e5   :  { %2464 = vmatprep.subr.bf16.mxu0 %v2855_v1  ;;  %2476 = vmatprep.subr.bf16.mxu1 %v2855_v1 }
 0x5e8   :  { %2466 = vmatpush3.bf16.msra.mxu0 %v3056_v43 }
 0x5e9   :  { %2467 = vmatprep.subr.bf16.mxu0 %v2855_v1 }
 0x5ec   :  { %2469 = vmatpush3.bf16.msra.mxu0 %v3061_v47 }
 0x5ed   :  { %2488 = vmatprep.subr.bf16.mxu0 %v2855_v1 }
 0x6b2   :  { %v614_v42 = vpop.f32.mrb[2].mxu1  ;;  %v713_v44 = vpop.f32.mrb[6].mxu0 }
 0x6b3   :  { %v615_v45 = vadd.f32 %v3093_v54, %v614_v42  ;;  %v718_v46 = vrot.slane %v713_v44, 4  ;;  %v2231_v48 = vpop.f32.mrb[3].mxu1  ;;  %v2242_v49 = vpop.f32.mrb[7].mxu0 }
 0x6b5   :  { %2599 = vtanh.f32 %v615_v45  ;;  %v720_v50 = vadd.f32 %v718_v46, %v3037_v19  ;;  %v2021_v53 = vmul.f32 -1.442695, %v615_v45 }
 0x6b7   :  { %2601 = vtanh.f32 %v720_v50  ;;  %v2023_v55 = vmul.f32 -1.442695, %v720_v50 }
 0x6b8   :  { %2603 = vpow2.f32 %v2021_v53 }
 0x6b9   :  { %2605 = vpow2.f32 %v2023_v55 }
 0x6bf   :  { %v2600_v51 = vpop.eup %2599 }
 0x6c0   :  { %627 = vrot.lane.b32.xlu0 %v2600_v51, %s2858_s18 }
 0x6c1   :  { %v2602_v52 = vpop.eup %2601 }
 0x6c2   :  { %733 = vrot.lane.b32.xlu1 %v2602_v52, %s2858_s18  ;;  %v2604_v56 = vpop.eup %2603 }
 0x6c3   :  { %v2606_v57 = vpop.eup %2605  ;;  %v621_v58 = vadd.f32 1.0, %v2604_v56 }
 0x6c4   :  { %v724_v59 = vadd.f32 1.0, %v2606_v57 }
 0x6c5   :  { %2607 = vrcp.f32 %v621_v58 }
 0x6c6   :  { %2609 = vrcp.f32 %v724_v59 }
 0x6cf   :  { %v2608_v60 = vpop.eup %2607 }
 0x6d0   :  { %v2610_v63 = vpop.eup %2609  ;;  %v625_v4 = vmul.f32 %v2608_v60, %v3106_v24 }
 0x6d1   :  { %v731_v8 = vmul.f32 %v2610_v63, %v729_v5 }
 0x732   :  { %v628_v61 = vpop.permute.xlu0 %627 }
 0x733   :  { %v630_v62 = vmul.f32 %v2608_v60, %v628_v61 }
 0x734   :  { %v734_v0 = vpop.permute.xlu1 %733 }
 0x735   :  { %632 = vrot.lane.b32.xlu0 %v630_v62, %s2859_s5  ;;  %v736_v3 = vmul.f32 %v2610_v63, %v734_v0 }
 0x737   :  { %738 = vrot.lane.b32.xlu1 %v736_v3, %s2859_s5 }
 0x7a7   :  { %v633_v6 = vpop.permute.xlu0 %632 }
 0x7a8   :  { %v3144_v7 = vadd.f32 %v633_v6, %v625_v4 }
 0x7a9   :  { %v739_v10 = vpop.permute.xlu1 %738 }
 0x7aa   :  { %2611 = vtanh.f32 %v3144_v7  ;;  %v3147_v11 = vadd.f32 %v739_v10, %v731_v8 }
 0x7ac   :  { %2613 = vtanh.f32 %v3147_v11  ;;  %v943_v53 = vrot.slane %v3147_v11, 6 }
 0x7b4   :  { %v2612_v12 = vpop.eup %2611 }
 0x7b5   :  { %638 = vrot.lane.b32.xlu0 %v2612_v12, %s2858_s18 }
 0x7b6   :  { %v2614_v14 = vpop.eup %2613 }
 0x7b7   :  { %744 = vrot.lane.b32.xlu1 %v2614_v14, %s2858_s18 }
 0x827   :  { %v639_v15 = vpop.permute.xlu0 %638 }
 0x828   :  { %v641_v16 = vmul.f32 %v2608_v60, %v639_v15 }
 0x829   :  { %v745_v20 = vpop.permute.xlu1 %744 }
 0x82a   :  { %v753_v18 = vrot.slane %v641_v16, 4  ;;  %v747_v21 = vmul.f32 %v2610_v63, %v745_v20 }
 0x82c   :  { %754 = vrot.lane.b32.xlu1 %v753_v18, %s2858_s18  ;;  %749 = vrot.lane.b32.xlu0 %v747_v21, %s2859_s5  ;;  %v856_v22 = vrot.slane %v747_v21, 4 }
 0x830   :  { %857 = vrot.lane.b32.xlu0 %v856_v22, %s2859_s5 }
 0x89e   :  { %v755_v23 = vpop.permute.xlu1 %754  ;;  %v750_v24 = vpop.permute.xlu0 %749 }
 0x89f   :  { %v757_v25 = vsel %vm211_vm2, %v750_v24, %v755_v23 }
 0x8a0   :  { %v759_v26 = vrot.slane %v757_v25, 4 }
 0x8a2   :  { %v858_v27 = vpop.permute.xlu0 %857  ;;  %2260 = vmatmul.mubr.msk.f32.vlgmr.msra.gmra.mrb[8].mxu0 %vm329_vm3, %v759_v26 }
 0x8a3   :  { %2271 = vmatmul.mubr.msk.f32.vlgmr.msra.gmra.mrb[4].mxu1 %vm211_vm2, %v858_v27  ;;  %2490 = vmatpush3.bf16.msra.mxu0 %v3010_v9 }
 0x8a4   :  { %2478 = vmatpush3.bf16.msra.mxu1 %v3049_v38  ;;  %2491 = vmatprep.subr.bf16.mxu0 %v2855_v1 }
 0x8a5   :  { %2479 = vmatprep.subr.bf16.mxu1 %v2855_v1  ;;  %2289 = vmatprep.mubr.msk.f32.mxu1 %vm2856_vm0, %v2857_v2 }
 0x8a6   :  { %2300 = vmatprep.mubr.msk.f32.mxu0 %vm2856_vm0, %v2857_v2 }
 0x8a7   :  { %2493 = vmatpush3.bf16.msra.mxu0 %v3016_v13 }
 0x8a8   :  { %2481 = vmatpush3.bf16.msra.mxu1 %v3052_v40  ;;  %2494 = vmatprep.subr.bf16.mxu0 %v2855_v1 }
 0x8a9   :  { %2482 = vmatprep.subr.bf16.mxu1 %v2855_v1 }
 0x8ac   :  { %2484 = vmatpush3.bf16.msra.mxu1 %v3056_v43 }
 0x8ad   :  { %2485 = vmatprep.subr.bf16.mxu1 %v2855_v1 }
 0x8b0   :  { %2487 = vmatpush3.bf16.msra.mxu1 %v3061_v47 }
 0x8b1   :  { %2506 = vmatprep.subr.bf16.mxu1 %v2855_v1 }
 0x975   :  { %v828_v28 = vpop.f32.mrb[8].mxu0 }
 0x976   :  { %v829_v29 = vadd.f32 %v3093_v54, %v828_v28  ;;  %v2261_v30 = vpop.f32.mrb[9].mxu0  ;;  %v927_v31 = vpop.f32.mrb[4].mxu1 }
 0x977   :  { %v932_v32 = vrot.slane %v927_v31, 2  ;;  %v2272_v33 = vpop.f32.mrb[5].mxu1 }
 0x978   :  { %2615 = vtanh.f32 %v829_v29  ;;  %v2025_v37 = vmul.f32 -1.442695, %v829_v29 }
 0x979   :  { %v934_v34 = vadd.f32 %v932_v32, %v3037_v19 }
 0x97b   :  { %2617 = vtanh.f32 %v934_v34  ;;  %v2027_v39 = vmul.f32 -1.442695, %v934_v34 }
 0x97c   :  { %2619 = vpow2.f32 %v2025_v37 }
 0x97d   :  { %2621 = vpow2.f32 %v2027_v39 }
 0x982   :  { %v2616_v35 = vpop.eup %2615 }
 0x983   :  { %841 = vrot.lane.b32.xlu1 %v2616_v35, %s2858_s18 }
 0x985   :  { %v2618_v36 = vpop.eup %2617 }
 0x986   :  { %947 = vrot.lane.b32.xlu0 %v2618_v36, %s2858_s18  ;;  %v2620_v41 = vpop.eup %2619 }
 0x987   :  { %v2622_v42 = vpop.eup %2621  ;;  %v835_v44 = vadd.f32 1.0, %v2620_v41 }
 0x988   :  { %v938_v45 = vadd.f32 1.0, %v2622_v42 }
 0x989   :  { %2623 = vrcp.f32 %v835_v44 }
 0x98a   :  { %2625 = vrcp.f32 %v938_v45 }
 0x993   :  { %v2624_v46 = vpop.eup %2623 }
 0x994   :  { %v2626_v49 = vpop.eup %2625  ;;  %v839_v52 = vmul.f32 %v2624_v46, %v3144_v7 }
 0x995   :  { %v945_v57 = vmul.f32 %v2626_v49, %v943_v53 }
 0x9f5   :  { %v842_v48 = vpop.permute.xlu1 %841 }
 0x9f6   :  { %v844_v19 = vmul.f32 %v2624_v46, %v842_v48 }
 0x9f8   :  { %v948_v50 = vpop.permute.xlu0 %947  ;;  %846 = vrot.lane.b32.xlu1 %v844_v19, %s2859_s5 }
 0x9f9   :  { %v950_v51 = vmul.f32 %v2626_v49, %v948_v50 }
 0x9fb   :  { %952 = vrot.lane.b32.xlu0 %v950_v51, %s2859_s5 }
 0xa6a   :  { %v847_v55 = vpop.permute.xlu1 %846 }
 0xa6b   :  { %v3182_v56 = vadd.f32 %v847_v55, %v839_v52 }
 0xa6d   :  { %2627 = vtanh.f32 %v3182_v56  ;;  %v953_v58 = vpop.permute.xlu0 %952 }
 0xa6e   :  { %v3185_v59 = vadd.f32 %v953_v58, %v945_v57 }
 0xa70   :  { %2629 = vtanh.f32 %v3185_v59  ;;  %v1154_v35 = vrot.slane %v3185_v59, 6 }
 0xa77   :  { %v2628_v60 = vpop.eup %2627 }
 0xa78   :  { %852 = vrot.lane.b32.xlu1 %v2628_v60, %s2858_s18 }
 0xa7a   :  { %v2630_v61 = vpop.eup %2629 }
 0xa7b   :  { %958 = vrot.lane.b32.xlu0 %v2630_v61, %s2858_s18 }
 0xaea   :  { %v853_v62 = vpop.permute.xlu1 %852 }
 0xaeb   :  { %v855_v63 = vmul.f32 %v2624_v46, %v853_v62 }
 0xaed   :  { %v967_v0 = vrot.slane %v855_v63, 2  ;;  %v959_v3 = vpop.permute.xlu0 %958 }
 0xaee   :  { %v961_v4 = vmul.f32 %v2626_v49, %v959_v3 }
 0xaef   :  { %968 = vrot.lane.b32.xlu0 %v967_v0, %s2858_s18 }
 0xaf0   :  { %963 = vrot.lane.b32.xlu1 %v961_v4, %s2859_s5  ;;  %v1070_v5 = vrot.slane %v961_v4, 6 }
 0xaf4   :  { %1071 = vrot.lane.b32.xlu1 %v1070_v5, %s2859_s5 }
 0xb61   :  { %v969_v6 = vpop.permute.xlu0 %968 }
 0xb62   :  { %v964_v7 = vpop.permute.xlu1 %963 }
 0xb63   :  { %v971_v8 = vsel %vm211_vm2, %v964_v7, %v969_v6 }
 0xb64   :  { %v973_v10 = vrot.slane %v971_v8, 6 }
 0xb66   :  { %2290 = vmatmul.mubr.msk.f32.vlgmr.msra.gmra.mrb[6].mxu1 %vm329_vm3, %v973_v10  ;;  %v1072_v11 = vpop.permute.xlu1 %1071 }
 0xb67   :  { %2301 = vmatmul.mubr.msk.f32.vlgmr.msra.gmra.mrb[10].mxu0 %vm211_vm2, %v1072_v11  ;;  %2508 = vmatpush3.bf16.msra.mxu1 %v3010_v9 }
 0xb68   :  { %2496 = vmatpush3.bf16.msra.mxu0 %v3049_v38  ;;  %2509 = vmatprep.subr.bf16.mxu1 %v2855_v1 }
 0xb69   :  { %2497 = vmatprep.subr.bf16.mxu0 %v2855_v1  ;;  %2330 = vmatprep.mubr.msk.f32.mxu1 %vm2856_vm0, %v2857_v2 }
 0xb6a   :  { %2319 = vmatprep.mubr.msk.f32.mxu0 %vm2856_vm0, %v2857_v2 }
 0xb6b   :  { %2511 = vmatpush3.bf16.msra.mxu1 %v3016_v13 }
 0xb6c   :  { %2499 = vmatpush3.bf16.msra.mxu0 %v3052_v40  ;;  %2512 = vmatprep.subr.bf16.mxu1 %v2855_v1 }
 0xb6d   :  { %2500 = vmatprep.subr.bf16.mxu0 %v2855_v1 }
 0xb70   :  { %2502 = vmatpush3.bf16.msra.mxu0 %v3056_v43 }
 0xb71   :  { %2503 = vmatprep.subr.bf16.mxu0 %v2855_v1 }
 0xb74   :  { %2505 = vmatpush3.bf16.msra.mxu0 %v3061_v47 }
 0xb75   :  { %2524 = vmatprep.subr.bf16.mxu0 %v2855_v1 }
 0xc39   :  { %v1042_v12 = vpop.f32.mrb[6].mxu1 }
 0xc3a   :  { %v1043_v14 = vadd.f32 %v3093_v54, %v1042_v12  ;;  %v2291_v15 = vpop.f32.mrb[7].mxu1  ;;  %v1141_v16 = vpop.f32.mrb[10].mxu0 }
 0xc3b   :  { %v1145_v18 = vadd.f32 %v1141_v16, %v3035_v17  ;;  %v2302_v20 = vpop.f32.mrb[11].mxu0 }
 0xc3c   :  { %2631 = vtanh.f32 %v1043_v14  ;;  %v2029_v23 = vmul.f32 -1.442695, %v1043_v14 }
 0xc3d   :  { %2633 = vtanh.f32 %v1145_v18  ;;  %v2031_v24 = vmul.f32 -1.442695, %v1145_v18 }
 0xc3e   :  { %2635 = vpow2.f32 %v2029_v23 }
 0xc3f   :  { %2637 = vpow2.f32 %v2031_v24 }
 0xc46   :  { %v2632_v21 = vpop.eup %2631 }
 0xc47   :  { %v2634_v22 = vpop.eup %2633  ;;  %1055 = vrot.lane.b32.xlu0 %v2632_v21, %s2858_s18 }
 0xc48   :  { %1158 = vrot.lane.b32.xlu1 %v2634_v22, %s2858_s18  ;;  %v2636_v25 = vpop.eup %2635 }
 0xc49   :  { %v2638_v26 = vpop.eup %2637  ;;  %v1049_v27 = vadd.f32 1.0, %v2636_v25 }
 0xc4a   :  { %v1149_v28 = vadd.f32 1.0, %v2638_v26 }
 0xc4b   :  { %2639 = vrcp.f32 %v1049_v27 }
 0xc4c   :  { %2641 = vrcp.f32 %v1149_v28 }
 0xc55   :  { %v2640_v29 = vpop.eup %2639 }
 0xc56   :  { %v2642_v31 = vpop.eup %2641  ;;  %v1053_v36 = vmul.f32 %v2640_v29, %v3182_v56 }
 0xc57   :  { %v1156_v39 = vmul.f32 %v2642_v31, %v1154_v35 }
 0xcb9   :  { %v1056_v30 = vpop.permute.xlu0 %1055 }
 0xcba   :  { %v1058_v32 = vmul.f32 %v2640_v29, %v1056_v30  ;;  %v1159_v33 = vpop.permute.xlu1 %1158 }
 0xcbb   :  { %v1161_v34 = vmul.f32 %v2642_v31, %v1159_v33 }
 0xcbc   :  { %1060 = vrot.lane.b32.xlu0 %v1058_v32, %s2859_s5 }
 0xcbd   :  { %1163 = vrot.lane.b32.xlu1 %v1161_v34, %s2859_s5 }
 0xd2e   :  { %v1061_v37 = vpop.permute.xlu0 %1060 }
 0xd2f   :  { %v3220_v41 = vadd.f32 %v1061_v37, %v1053_v36  ;;  %v1164_v42 = vpop.permute.xlu1 %1163 }
 0xd30   :  { %v3222_v44 = vadd.f32 %v1164_v42, %v1156_v39 }
 0xd31   :  { %2643 = vtanh.f32 %v3220_v41 }
 0xd32   :  { %2645 = vtanh.f32 %v3222_v44  ;;  %v1363_v16 = vrot.slane %v3222_v44, 6 }
 0xd3b   :  { %v2644_v45 = vpop.eup %2643 }
 0xd3c   :  { %v2646_v46 = vpop.eup %2645  ;;  %1066 = vrot.lane.b32.xlu0 %v2644_v45, %s2858_s18 }
 0xd3d   :  { %1169 = vrot.lane.b32.xlu1 %v2646_v46, %s2858_s18 }
 0xdae   :  { %v1067_v48 = vpop.permute.xlu0 %1066 }
 0xdaf   :  { %v1069_v19 = vmul.f32 %v2640_v29, %v1067_v48  ;;  %v1170_v49 = vpop.permute.xlu1 %1169 }
 0xdb0   :  { %v1172_v50 = vmul.f32 %v2642_v31, %v1170_v49 }
 0xdb1   :  { %1178 = vrot.lane.b32.xlu1 %v1069_v19, %s2858_s18 }
 0xdb2   :  { %1174 = vrot.lane.b32.xlu0 %v1172_v50, %s2859_s5 }
 0xe23   :  { %v1179_v51 = vpop.permute.xlu1 %1178 }
 0xe24   :  { %v1175_v52 = vpop.permute.xlu0 %1174 }
 0xe25   :  { %v1181_v53 = vsel %vm211_vm2, %v1175_v52, %v1179_v51  ;;  %2331 = vmatmul.mubr.msk.f32.vlgmr.msra.gmra.mrb[8].mxu1 %vm211_vm2, %v1175_v52 }
 0xe26   :  { %2320 = vmatmul.mubr.msk.f32.vlgmr.msra.gmra.mrb[12].mxu0 %vm329_vm3, %v1181_v53  ;;  %2514 = vmatpush3.bf16.msra.mxu1 %v3049_v38 }
 0xe27   :  { %2515 = vmatprep.subr.bf16.mxu1 %v2855_v1  ;;  %2526 = vmatpush3.bf16.msra.mxu0 %v3010_v9 }
 0xe28   :  { %2527 = vmatprep.subr.bf16.mxu0 %v2855_v1  ;;  %2349 = vmatprep.mubr.msk.f32.mxu1 %vm2856_vm0, %v2857_v2 }
 0xe29   :  { %2360 = vmatprep.mubr.msk.f32.mxu0 %vm2856_vm0, %v2857_v2 }
 0xe2a   :  { %2517 = vmatpush3.bf16.msra.mxu1 %v3052_v40 }
 0xe2b   :  { %2518 = vmatprep.subr.bf16.mxu1 %v2855_v1  ;;  %2529 = vmatpush3.bf16.msra.mxu0 %v3016_v13 }
 0xe2c   :  { %2530 = vmatprep.subr.bf16.mxu0 %v2855_v1 }
 0xe2e   :  { %2520 = vmatpush3.bf16.msra.mxu1 %v3056_v43 }
 0xe2f   :  { %2521 = vmatprep.subr.bf16.mxu1 %v2855_v1 }
 0xe32   :  { %2523 = vmatpush3.bf16.msra.mxu1 %v3061_v47 }
 0xe33   :  { %2542 = vmatprep.subr.bf16.mxu1 %v2855_v1 }
 0xef8   :  { %v1347_v55 = vpop.f32.mrb[8].mxu1 }
 0xef9   :  { %v1352_v56 = vrot.slane %v1347_v55, 6  ;;  %v1251_v57 = vpop.f32.mrb[12].mxu0  ;;  %v2332_v58 = vpop.f32.mrb[9].mxu1 }
 0xefa   :  { %v1252_v59 = vadd.f32 %v3093_v54, %v1251_v57  ;;  %v2321_v60 = vpop.f32.mrb[13].mxu0 }
 0xefb   :  { %v1354_v61 = vadd.f32 %v1352_v56, %v3035_v17 }
 0xefc   :  { %2647 = vtanh.f32 %v1252_v59  ;;  %v2033_v0 = vmul.f32 -1.442695, %v1252_v59 }
 0xefd   :  { %2649 = vtanh.f32 %v1354_v61  ;;  %v2035_v3 = vmul.f32 -1.442695, %v1354_v61 }
 0xefe   :  { %2651 = vpow2.f32 %v2033_v0 }
 0xeff   :  { %2653 = vpow2.f32 %v2035_v3 }
 0xf06   :  { %v2648_v62 = vpop.eup %2647 }
 0xf07   :  { %v2650_v63 = vpop.eup %2649  ;;  %1264 = vrot.lane.b32.xlu0 %v2648_v62, %s2858_s18 }
 0xf08   :  { %1367 = vrot.lane.b32.xlu1 %v2650_v63, %s2858_s18  ;;  %v2652_v4 = vpop.eup %2651 }
 0xf09   :  { %v2654_v5 = vpop.eup %2653  ;;  %v1258_v6 = vadd.f32 1.0, %v2652_v4 }
 0xf0a   :  { %v1358_v7 = vadd.f32 1.0, %v2654_v5 }
 0xf0b   :  { %2655 = vrcp.f32 %v1258_v6 }
 0xf0c   :  { %2657 = vrcp.f32 %v1358_v7 }
 0xf15   :  { %v2656_v8 = vpop.eup %2655 }
 0xf16   :  { %v2658_v11 = vpop.eup %2657  ;;  %v1262_v18 = vmul.f32 %v2656_v8, %v3220_v41 }
 0xf17   :  { %v1365_v21 = vmul.f32 %v2658_v11, %v1363_v16 }
 0xf79   :  { %v1265_v10 = vpop.permute.xlu0 %1264 }
 0xf7a   :  { %v1267_v12 = vmul.f32 %v2656_v8, %v1265_v10  ;;  %v1368_v14 = vpop.permute.xlu1 %1367 }
 0xf7b   :  { %v1370_v15 = vmul.f32 %v2658_v11, %v1368_v14 }
 0xf7c   :  { %1269 = vrot.lane.b32.xlu0 %v1267_v12, %s2859_s5 }
 0xf7d   :  { %1372 = vrot.lane.b32.xlu1 %v1370_v15, %s2859_s5 }
 0xfee   :  { %v1270_v20 = vpop.permute.xlu0 %1269 }
 0xfef   :  { %v3257_v22 = vadd.f32 %v1270_v20, %v1262_v18  ;;  %v1373_v23 = vpop.permute.xlu1 %1372 }
 0xff0   :  { %v3259_v24 = vadd.f32 %v1373_v23, %v1365_v21 }
 0xff1   :  { %2659 = vtanh.f32 %v3257_v22 }
 0xff2   :  { %2661 = vtanh.f32 %v3259_v24  ;;  %v1577_v62 = vrot.slane %v3259_v24, 6 }
 0xffb   :  { %v2660_v25 = vpop.eup %2659 }
 0xffc   :  { %v2662_v26 = vpop.eup %2661  ;;  %1275 = vrot.lane.b32.xlu0 %v2660_v25, %s2858_s18 }
 0xffd   :  { %1378 = vrot.lane.b32.xlu1 %v2662_v26, %s2858_s18 }
0x106e   :  { %v1276_v27 = vpop.permute.xlu0 %1275 }
0x106f   :  { %v1278_v28 = vmul.f32 %v2656_v8, %v1276_v27  ;;  %v1379_v29 = vpop.permute.xlu1 %1378 }
0x1070   :  { %v1381_v30 = vmul.f32 %v2658_v11, %v1379_v29 }
0x1071   :  { %v1387_v31 = vrot.slane %v1278_v28, 6 }
0x1072   :  { %1383 = vrot.lane.b32.xlu0 %v1381_v30, %s2859_s5  ;;  %v1490_v32 = vrot.slane %v1381_v30, 2 }
0x1073   :  { %1388 = vrot.lane.b32.xlu1 %v1387_v31, %s2858_s18 }
0x1076   :  { %1491 = vrot.lane.b32.xlu0 %v1490_v32, %s2859_s5 }
0x10e4   :  { %v1384_v33 = vpop.permute.xlu0 %1383 }
0x10e5   :  { %v1389_v34 = vpop.permute.xlu1 %1388 }
0x10e6   :  { %v1391_v35 = vsel %vm211_vm2, %v1384_v33, %v1389_v34 }
0x10e7   :  { %v1393_v36 = vrot.slane %v1391_v35, 2 }
0x10e8   :  { %v1492_v37 = vpop.permute.xlu0 %1491 }
0x10e9   :  { %2350 = vmatmul.mubr.msk.f32.vlgmr.msra.gmra.mrb[10].mxu1 %vm329_vm3, %v1393_v36  ;;  %2361 = vmatmul.mubr.msk.f32.vlgmr.msra.gmra.mrb[14].mxu0 %vm211_vm2, %v1492_v37 }
0x10ea   :  { %2532 = vmatpush3.bf16.msra.mxu0 %v3049_v38  ;;  %2544 = vmatpush3.bf16.msra.mxu1 %v3010_v9 }
0x10eb   :  { %2533 = vmatprep.subr.bf16.mxu0 %v2855_v1  ;;  %2545 = vmatprep.subr.bf16.mxu1 %v2855_v1 }
0x10ec   :  { %2379 = vmatprep.mubr.msk.f32.mxu0 %vm2856_vm0, %v2857_v2  ;;  %2390 = vmatprep.mubr.msk.f32.mxu1 %vm2856_vm0, %v2857_v2 }
0x10ee   :  { %2535 = vmatpush3.bf16.msra.mxu0 %v3052_v40  ;;  %2547 = vmatpush3.bf16.msra.mxu1 %v3016_v13 }
0x10ef   :  { %2536 = vmatprep.subr.bf16.mxu0 %v2855_v1  ;;  %2548 = vmatprep.subr.bf16.mxu1 %v2855_v1 }
0x10f2   :  { %2538 = vmatpush3.bf16.msra.mxu0 %v3056_v43 }
0x10f3   :  { %2539 = vmatprep.subr.bf16.mxu0 %v2855_v1 }
0x10f6   :  { %2541 = vmatpush3.bf16.msra.mxu0 %v3061_v47 }
0x11bc   :  { %v1462_v9 = vpop.f32.mrb[10].mxu1  ;;  %v1561_v39 = vpop.f32.mrb[14].mxu0 }
0x11bd   :  { %v1463_v41 = vadd.f32 %v3093_v54, %v1462_v9  ;;  %v1566_v42 = vrot.slane %v1561_v39, 4  ;;  %v2351_v44 = vpop.f32.mrb[11].mxu1  ;;  %v2362_v45 = vpop.f32.mrb[15].mxu0 }
0x11bf   :  { %2663 = vtanh.f32 %v1463_v41  ;;  %v1568_v13 = vadd.f32 %v1566_v42, %v3035_v17  ;;  %v2037_v19 = vmul.f32 -1.442695, %v1463_v41 }
0x11c1   :  { %2665 = vtanh.f32 %v1568_v13  ;;  %v2039_v49 = vmul.f32 -1.442695, %v1568_v13 }
0x11c2   :  { %2667 = vpow2.f32 %v2037_v19 }
0x11c3   :  { %2669 = vpow2.f32 %v2039_v49 }
0x11c9   :  { %v2664_v46 = vpop.eup %2663 }
0x11ca   :  { %1475 = vrot.lane.b32.xlu1 %v2664_v46, %s2858_s18 }
0x11cb   :  { %v2666_v48 = vpop.eup %2665 }
0x11cc   :  { %1581 = vrot.lane.b32.xlu0 %v2666_v48, %s2858_s18  ;;  %v2668_v50 = vpop.eup %2667 }
0x11cd   :  { %v2670_v51 = vpop.eup %2669  ;;  %v1469_v52 = vadd.f32 1.0, %v2668_v50 }
0x11ce   :  { %v1572_v53 = vadd.f32 1.0, %v2670_v51 }
0x11cf   :  { %2671 = vrcp.f32 %v1469_v52 }
0x11d0   :  { %2673 = vrcp.f32 %v1572_v53 }
0x11d9   :  { %v2672_v55 = vpop.eup %2671 }
0x11da   :  { %v2674_v58 = vpop.eup %2673  ;;  %v1473_v61 = vmul.f32 %v2672_v55, %v3257_v22 }
0x11db   :  { %v1579_v3 = vmul.f32 %v2674_v58, %v1577_v62 }
0x123c   :  { %v1476_v56 = vpop.permute.xlu1 %1475 }
0x123d   :  { %v1478_v57 = vmul.f32 %v2672_v55, %v1476_v56 }
0x123e   :  { %v1582_v59 = vpop.permute.xlu0 %1581 }
0x123f   :  { %1480 = vrot.lane.b32.xlu1 %v1478_v57, %s2859_s5  ;;  %v1584_v60 = vmul.f32 %v2674_v58, %v1582_v59 }
0x1241   :  { %1586 = vrot.lane.b32.xlu0 %v1584_v60, %s2859_s5 }
0x12b1   :  { %v1481_v63 = vpop.permute.xlu1 %1480 }
0x12b2   :  { %v3294_v0 = vadd.f32 %v1481_v63, %v1473_v61 }
0x12b3   :  { %v1587_v4 = vpop.permute.xlu0 %1586 }
0x12b4   :  { %2675 = vtanh.f32 %v3294_v0  ;;  %v3297_v5 = vadd.f32 %v1587_v4, %v1579_v3 }
0x12b6   :  { %2677 = vtanh.f32 %v3297_v5  ;;  %v1791_v9 = vrot.slane %v3297_v5, 6  ;;  %v2046_v5 = vld [vmem:[%s3381_s8] ss:$0 sm:$0xff]  ;;  %s2861_s8 = smov [#allocation11]  }
0x12b7   :  { %s1976_s27 = sshll.u32 %s2861_s8, 4  ;;  %s1977_s27 = int_to_ptr.vmem [resolvable:$true] %s1976_s27 }
0x12b8   :  { %s2795_s3 = scalar_lea.vmem %s1977_s27, 64  ;;  %p2800_p5 = scmp.lt.s32.totalorder %s1977_s27, %s1977_s27 }
0x12b9   :  { %p2796_p4 = scmp.ne.s32.totalorder %s1977_s27, %s2795_s3  ;;  %p2801_p6 = scmp.lt.s32.totalorder %s2795_s3, %s2795_s3 }
0x12bb   :  { %p2802_p7 = por %p2801_p6, %p2800_p5 }
0x12bd   :  { %p2803_p8 = pnand %p2802_p7, %p2796_p4 }
0x12be   :  { %v2676_v6 = vpop.eup %2675 }
0x12bf   :  { %1486 = vrot.lane.b32.xlu1 %v2676_v6, %s2858_s18 }
0x12c0   :  { %v2678_v7 = vpop.eup %2677 }
0x12c1   :  { %1592 = vrot.lane.b32.xlu0 %v2678_v7, %s2858_s18 }
0x1331   :  { %v1487_v8 = vpop.permute.xlu1 %1486 }
0x1332   :  { %v1489_v10 = vmul.f32 %v2672_v55, %v1487_v8 }
0x1333   :  { %v1593_v12 = vpop.permute.xlu0 %1592 }
0x1334   :  { %v1601_v11 = vrot.slane %v1489_v10, 4  ;;  %v1595_v14 = vmul.f32 %v2674_v58, %v1593_v12 }
0x1336   :  { %1602 = vrot.lane.b32.xlu0 %v1601_v11, %s2858_s18  ;;  %1597 = vrot.lane.b32.xlu1 %v1595_v14, %s2859_s5  ;;  %v1704_v15 = vrot.slane %v1595_v14, 4 }
0x133a   :  { %1705 = vrot.lane.b32.xlu1 %v1704_v15, %s2859_s5 }
0x13a8   :  { %v1603_v16 = vpop.permute.xlu0 %1602  ;;  %v1598_v18 = vpop.permute.xlu1 %1597 }
0x13a9   :  { %v1605_v20 = vsel %vm211_vm2, %v1598_v18, %v1603_v16 }
0x13aa   :  { %v1607_v21 = vrot.slane %v1605_v20, 4 }
0x13ac   :  { %v1706_v22 = vpop.permute.xlu1 %1705  ;;  %2380 = vmatmul.mubr.msk.f32.vlgmr.msra.gmra.mrb[16].mxu0 %vm329_vm3, %v1607_v21 }
0x13ad   :  { %2391 = vmatmul.mubr.msk.f32.vlgmr.msra.gmra.mrb[12].mxu1 %vm211_vm2, %v1706_v22 }
0x13ae   :  { %2550 = vmatpush3.bf16.msra.mxu1 %v3049_v38  ;;  %2409 = vmatprep.mubr.msk.f32.mxu1 %vm2856_vm0, %v2857_v2 }
0x13af   :  { %2551 = vmatprep.subr.bf16.mxu1 %v2855_v1 }
0x13b2   :  { %2553 = vmatpush3.bf16.msra.mxu1 %v3052_v40 }
0x13b3   :  { %2554 = vmatprep.subr.bf16.mxu1 %v2855_v1 }
0x13b6   :  { %2556 = vmatpush3.bf16.msra.mxu1 %v3056_v43 }
0x13b7   :  { %2557 = vmatprep.subr.bf16.mxu1 %v2855_v1 }
0x13ba   :  { %2559 = vmatpush3.bf16.msra.mxu1 %v3061_v47 }
0x147f   :  { %v1676_v23 = vpop.f32.mrb[16].mxu0 }
0x1480   :  { %v1677_v24 = vadd.f32 %v3093_v54, %v1676_v23  ;;  %v2381_v25 = vpop.f32.mrb[17].mxu0  ;;  %v1775_v38 = vpop.f32.mrb[12].mxu1 }
0x1481   :  { %v1780_v26 = vrot.slane %v1775_v38, 2  ;;  %v2392_v27 = vpop.f32.mrb[13].mxu1 }
0x1482   :  { %2679 = vtanh.f32 %v1677_v24  ;;  %v2041_v1 = vmul.f32 -1.442695, %v1677_v24 }
0x1483   :  { %v1782_v2 = vadd.f32 %v1780_v26, %v3035_v17 }
0x1485   :  { %2681 = vtanh.f32 %v1782_v2  ;;  %v2043_v43 = vmul.f32 -1.442695, %v1782_v2 }
0x1486   :  { %2683 = vpow2.f32 %v2041_v1 }
0x1487   :  { %2685 = vpow2.f32 %v2043_v43 }
0x148c   :  { %v2680_v40 = vpop.eup %2679 }
0x148d   :  { %1689 = vrot.lane.b32.xlu0 %v2680_v40, %s2858_s18 }
0x148f   :  { %v2682_v28 = vpop.eup %2681 }
0x1490   :  { %1795 = vrot.lane.b32.xlu1 %v2682_v28, %s2858_s18  ;;  %v2684_v47 = vpop.eup %2683 }
0x1491   :  { %v2686_v29 = vpop.eup %2685  ;;  %v1683_v30 = vadd.f32 1.0, %v2684_v47 }
0x1492   :  { %v1786_v31 = vadd.f32 1.0, %v2686_v29 }
0x1493   :  { %2687 = vrcp.f32 %v1683_v30 }
0x1494   :  { %2689 = vrcp.f32 %v1786_v31 }
0x149d   :  { %v2688_v32 = vpop.eup %2687 }
0x149e   :  { %v2690_v34 = vpop.eup %2689  ;;  %v1687_v37 = vmul.f32 %v2688_v32, %v3294_v0 }
0x149f   :  { %v1793_v42 = vmul.f32 %v2690_v34, %v1791_v9 }
0x14ff   :  { %v1690_v33 = vpop.permute.xlu0 %1689 }
0x1500   :  { %v1692_v17 = vmul.f32 %v2688_v32, %v1690_v33 }
0x1502   :  { %v1796_v35 = vpop.permute.xlu1 %1795  ;;  %1694 = vrot.lane.b32.xlu0 %v1692_v17, %s2859_s5 }
0x1503   :  { %v1798_v36 = vmul.f32 %v2690_v34, %v1796_v35 }
0x1505   :  { %1800 = vrot.lane.b32.xlu1 %v1798_v36, %s2859_s5 }
0x1574   :  { %v1695_v39 = vpop.permute.xlu0 %1694 }
0x1575   :  { %v1697_v41 = vadd.f32 %v1695_v39, %v1687_v37 }
0x1577   :  { %2691 = vtanh.f32 %v1697_v41  ;;  %v1801_v44 = vpop.permute.xlu1 %1800 }
0x1578   :  { %v1803_v45 = vadd.f32 %v1801_v44, %v1793_v42 }
0x157a   :  { %2693 = vtanh.f32 %v1803_v45 }
0x1581   :  { %v2692_v13 = vpop.eup %2691 }
0x1582   :  { %1700 = vrot.lane.b32.xlu0 %v2692_v13, %s2858_s18 }
0x1584   :  { %v2694_v46 = vpop.eup %2693 }
0x1585   :  { %1806 = vrot.lane.b32.xlu1 %v2694_v46, %s2858_s18 }
0x15f4   :  { %v1701_v48 = vpop.permute.xlu0 %1700 }
0x15f5   :  { %v1703_v19 = vmul.f32 %v2688_v32, %v1701_v48 }
0x15f7   :  { %v1815_v49 = vrot.slane %v1703_v19, 2  ;;  %v1807_v50 = vpop.permute.xlu1 %1806 }
0x15f8   :  { %v1809_v51 = vmul.f32 %v2690_v34, %v1807_v50 }
0x15f9   :  { %1816 = vrot.lane.b32.xlu1 %v1815_v49, %s2858_s18 }
0x15fa   :  { %1811 = vrot.lane.b32.xlu0 %v1809_v51, %s2859_s5 }
0x166b   :  { %v1817_v52 = vpop.permute.xlu1 %1816 }
0x166c   :  { %v1812_v53 = vpop.permute.xlu0 %1811 }
0x166d   :  { %v1819_v55 = vsel %vm211_vm2, %v1812_v53, %v1817_v52  ;;  %1951 = vst.msk [vmem:[#allocation11 - $0x6] sm:$0xc0] %vm1950_vm4, %v1812_v53 }
0x166e   :  { %v1821_v56 = vrot.slane %v1819_v55, 6 }
0x1670   :  { %2410 = vmatmul.mubr.msk.f32.vlgmr.msra.gmra.mrb[14].mxu1 %vm329_vm3, %v1821_v56 }
0x1743   :  { %v1890_v57 = vpop.f32.mrb[14].mxu1 }
0x1744   :  { %v1891_v58 = vadd.f32 %v3093_v54, %v1890_v57  ;;  %v2411_v59 = vpop.f32.mrb[15].mxu1 }
0x1746   :  { %2695 = vtanh.f32 %v1891_v58  ;;  %v2045_v61 = vmul.f32 -1.442695, %v1891_v58 }
0x1748   :  { %2697 = vpow2.f32 %v2045_v61 }
0x1750   :  { %v2696_v60 = vpop.eup %2695 }
0x1751   :  { %1903 = vrot.lane.b32.xlu0 %v2696_v60, %s2858_s18 }
0x1752   :  { %v2698_v62 = vpop.eup %2697 }
0x1753   :  { %v1897_v63 = vadd.f32 1.0, %v2698_v62 }
0x1755   :  { %2699 = vrcp.f32 %v1897_v63 }
0x175f   :  { %v2700_v0 = vpop.eup %2699 }
0x1760   :  { %v1901_v54 = vmul.f32 %v2700_v0, %v1697_v41 }
0x17c3   :  { %v1904_v3 = vpop.permute.xlu0 %1903 }
0x17c4   :  { %v1906_v4 = vmul.f32 %v2700_v0, %v1904_v3 }
0x17c6   :  { %1908 = vrot.lane.b32.xlu1 %v1906_v4, %s2859_s5 }
0x17ca   :  { %1923 = vrot.lane.b32.xlu1 %v2046_v5, %s2860_s25 }
0x1838   :  { %v1909_v6 = vpop.permute.xlu1 %1908 }
0x1839   :  { %v1911_v7 = vadd.f32 %v1909_v6, %v1901_v54 }
0x183b   :  { %2701 = vtanh.f32 %v1911_v7 }
0x183c   :  { %v1924_v11 = vpop.permute.xlu1 %1923 }
0x1845   :  { %v2702_v8 = vpop.eup %2701 }
0x1846   :  { %1914 = vrot.lane.b32.xlu0 %v2702_v8, %s2858_s18 }
0x18b8   :  { %v1915_v10 = vpop.permute.xlu0 %1914 }
0x18b9   :  { %v1917_v12 = vmul.f32 %v2700_v0, %v1915_v10 }
0x18bb   :  { %v1926_v14 = vmul.f32 %v1924_v11, %v1917_v12 }
0x18bd   :  { %1928 = vrot.lane.b32.xlu0 %v1926_v14, %s2859_s5 }
0x18c1   :  { %1953 = vrot.lane.b32.xlu0 %v1803_v45, %s2860_s25 }
0x18c5   :  { %1958 = vrot.lane.b32.xlu0 %v1917_v12, %s2859_s5 }
0x18c9   :  { %1964 = vrot.lane.b32.xlu0 %v1911_v7, %s2860_s25 }
0x192f   :  { %v1929_v15 = vpop.permute.xlu0 %1928 }
0x1930   :  { %v1932_v16 = vsel %vm1931_vm5, %v1929_v15, 0.0 }
0x1931   :  { %1933 = vadd.xlane.f32.xlu1 %v1932_v16 }
0x1933   :  { %v1954_v18 = vpop.permute.xlu0 %1953 }
0x1934   :  { %1956 = vst.msk [vmem:[#allocation12 - $0x6] sm:$0xc0] %vm1950_vm4, %v1954_v18 }
0x1937   :  { %v1959_v20 = vpop.permute.xlu0 %1958 }
0x1938   :  { %1962 = vst.msk [vmem:[#allocation11 + $0x2] sm:$0x3] %vm1931_vm5, %v1959_v20 }
0x193b   :  { %v1965_v21 = vpop.permute.xlu0 %1964 }
0x193c   :  { %1968 = vst.msk [vmem:[#allocation12 + $0x2] sm:$0x3] %vm1931_vm5, %v1965_v21 }
0x193d   :  { %2806 = shalt.err (!%p2803_p8)
}
0x193e   :  { %s2807_s9 = scalar_lea.hbm %s3384_s11, 64 }
0x193f   :  { %p2808_p9 = scmp.ne.s32.totalorder %s3384_s11, %s2807_s9  ;;  %p2811_p10 = scmp.lt.u32.totalorder %s2807_s9, %s3384_s11 }
0x1941   :  { %p2813_p11 = pnand %p2811_p10, %p2808_p9 }
0x1943   :  { %2816 = shalt.err (!%p2813_p11)
}
0x1944   :  { %s2863_s16 = smov 2   ;;  %s2817_s18 = scalar_lea.vmem %s1989_s29, 64 }
0x1945   :  { %1982 = dma.vmem_to_hbm [thread:$0]  %s1977_s27, 64, %s3384_s11, [#allocation5], %s2859_s5, %s2859_s5, %s2863_s16  }
0x1946   :  { %p2818_p12 = scmp.ne.s32.totalorder %s1989_s29, %s2817_s18  ;;  %p2822_p13 = scmp.lt.s32.totalorder %s1989_s29, %s1989_s29 }
0x1947   :  { %p2823_p0 = scmp.lt.s32.totalorder %s2817_s18, %s2817_s18 }
0x1949   :  { %p2824_p1 = por %p2823_p0, %p2822_p13 }
0x194b   :  { %p2825_p2 = pnand %p2824_p1, %p2818_p12 }
0x194d   :  { %2828 = shalt.err (!%p2825_p2)
}
0x194e   :  { %s2829_s21 = scalar_lea.hbm %s3385_s12, 64 }
0x194f   :  { %p2830_p3 = scmp.ne.s32.totalorder %s3385_s12, %s2829_s21  ;;  %p2833_p4 = scmp.lt.u32.totalorder %s2829_s21, %s3385_s12 }
0x1951   :  { %p2835_p5 = pnand %p2833_p4, %p2830_p3 }
0x1953   :  { %2838 = shalt.err (!%p2835_p5)
}
0x1954   :  { %1994 = dma.vmem_to_hbm [thread:$0]  %s1989_s29, 64, %s3385_s12, [#allocation13], %s2859_s5, %s2859_s5, %s2863_s16   ;;  %v2047_v22 = vld [vmem:[#allocation2] ss:$0 sm:$0xff]  ;;  %vm1948_vm6 = vcmask 1024  }
0x19be   :  { %v1934_v23 = vpop.xlane.xlu1 %1933 }
0x19bf   :  { %v1941_v24 = vadd.f32 %v2047_v22, %v1934_v23 }
0x19c1   :  { %v2048_v25 = vmul.f32 -1.442695, %v1941_v24 }
0x19c3   :  { %2703 = vpow2.f32 %v2048_v25 }
0x19cd   :  { %v2704_v38 = vpop.eup %2703 }
0x19ce   :  { %v1945_v26 = vadd.f32 1.0, %v2704_v38 }
0x19d0   :  { %2705 = vrcp.f32 %v1945_v26 }
0x19da   :  { %v2706_v27 = vpop.eup %2705 }
0x19db   :  { %1949 = vst.msk [vmem:[%s3383_s10] sm:$0x3] %vm1948_vm6, %v2706_v27 }
0x19dc   :  { %2845 = dma.done.wait [#allocation5], 64  }
0x19dd   :  { %2846 = vsyncadd [#allocation5], 4294967232 }
0x19de   :  { %2847 = dma.done.wait [#allocation13], 64  }
0x19df   :  { %2848 = vsyncadd [#allocation13], 4294967232 }
0x19e0   :  { %2003 = vsyncpa [#allocation4], 1 }
0x19e1   :  { %2004 = vsyncpa [#allocation7], 1 }
0x19e2   :  { %2005 = vsyncpa [#allocation10], 1 }
0x19e3   :  { %2006 = vsyncpa [#allocation5], 1 }
0x19e4   :  { %2007 = vsyncpa [#allocation13], 1 }

</bundles_post_ra>
